<compile_context>
chip_gen: v5e
topology: v5e:2x2
jax: 0.10.0
libtpu: 0.0.40
codegen_flags: <defaults>
</compile_context>

<pallas_src>
import functools

import jax
import jax.numpy as jnp
from jax import lax
from jax.experimental import pallas as pl
from jax.experimental.pallas import tpu as pltpu


_VMEM_TILE_BUDGET = 24 * 1024 * 1024     # per-grid-step working-set target (fits v7x)
_MASK_NEG = -1e30                        # finite -inf surrogate for cross-batch scores


def _round_up(n, m):
    return ((n + m - 1) // m) * m


def prepare_attention_params(wq, bq, wk, bk, wv, bv, dtype=None):
    """Fuse the three projections into one (D_in, 3*d_pad) weight, ONCE.

    Each projection is zero-padded to d_pad = round_up(D_out, 128) lanes so the
    in-kernel q/k/v slices are lane-aligned.  Padded weight AND bias columns
    are exactly zero, so q@k^T and p@v are unchanged.
    """
    d_in, d_out = wq.shape
    dtype = dtype or wq.dtype
    d_pad = _round_up(d_out, 128)
    pad = d_pad - d_out

    def pw(w):
        return jnp.pad(w.astype(dtype), ((0, 0), (0, pad)))

    def pb(b):
        return jnp.pad(b.astype(dtype), ((0, pad),))

    w_fused = jnp.concatenate([pw(wq), pw(wk), pw(wv)], axis=1)       # (d_in, 3*d_pad)
    b_fused = jnp.concatenate([pb(bq), pb(bk), pb(bv)])[None, :]       # (1, 3*d_pad)
    return w_fused, b_fused, d_out


def _estimate_step_bytes(rows, seq, d_in, d_pad, d_out, itemsize, blockdiag):
    """Rough per-grid-step VMEM working set (double-buffered tiles + f32 temps)."""
    x_tile = 2 * rows * d_in * itemsize              # input tile (double-buffered)
    o_tile = 2 * rows * d_out * itemsize             # output tile (double-buffered)
    w_tile = 2 * (d_in + 1) * 3 * d_pad * itemsize   # fused W + bias (double-buffered)
    qkv = 2 * rows * 3 * d_pad * 4                   # f32 qkv + q/k/v working copies
    sc = rows if blockdiag else seq
    scores = 2 * sc * sc * 4                         # scores + probs (f32)
    ctx = rows * d_pad * 4
    return x_tile + o_tile + w_tile + qkv + scores + ctx


def _choose_batch_block(B, S, d_in, d_pad, d_out, itemsize, max_blockdiag_rows):
    """Pick batch_block so the per-step working set fits the VMEM budget and,
    when possible, the grid has >= 2 steps (feeds both TCs on v7x, enables
    DMA/compute overlap)."""
    cands = []
    for bb in range(1, B + 1):
        if B % bb:
            continue
        rows = bb * S
        # (8,128) constraint: block rows must be a multiple of 8 unless the
        # block covers the full row extent (ragged S is handled by bb == B).
        if rows % 8 and bb != B:
            continue
        blockdiag = (bb == 1) or (rows <= max_blockdiag_rows)
        est = _estimate_step_bytes(rows, S, d_in, d_pad, d_out, itemsize, blockdiag)
        cands.append((bb, est))
    feasible = [bb for bb, est in cands if est <= _VMEM_TILE_BUDGET]
    if not feasible:
        return min(bb for bb, _ in cands)            # best effort: smallest legal tile
    multi = [bb for bb in feasible if B // bb >= 2]
    return max(multi) if multi else max(feasible)


def _attention_blockdiag_kernel(*refs, n_batch, d_pad, d_out, scale, mm_dtype):
    """All batches of this grid step as ONE block-diagonal masked attention."""
    if n_batch > 1:
        x_ref, w_ref, b_ref, mask_ref, o_ref = refs
    else:
        x_ref, w_ref, b_ref, o_ref = refs
        mask_ref = None

    # Fused QKV projection: one MXU pass over the padded 3*d_pad width.
    qkv = jnp.dot(x_ref[...].astype(mm_dtype), w_ref[...].astype(mm_dtype),
                  preferred_element_type=jnp.float32)
    qkv = qkv + b_ref[...].astype(jnp.float32)

    # Lane-aligned static slices (d_pad % 128 == 0).  Fold the 1/sqrt(D) scale
    # into q (cheaper than scaling the rows x rows scores).
    q = (qkv[:, 0:d_pad] * jnp.float32(scale)).astype(mm_dtype)
    k = qkv[:, d_pad:2 * d_pad].astype(mm_dtype)
    v = qkv[:, 2 * d_pad:3 * d_pad].astype(mm_dtype)

    # One (rows x rows) scores matmul (q @ k^T without materializing k^T).
    s = lax.dot_general(q, k, dimension_numbers=(((1,), (1,)), ((), ())),
                        preferred_element_type=jnp.float32)
    if mask_ref is not None:
        s = s + mask_ref[...]                         # -1e30 on cross-batch entries

    # Numerically stable softmax along the last axis (f32 statistics).
    s = s - jnp.max(s, axis=-1, keepdims=True)
    p = jnp.exp(s)
    p = p * pl.reciprocal(jnp.sum(p, axis=-1, keepdims=True), approx=True)

    ctx = jnp.dot(p.astype(mm_dtype), v, preferred_element_type=jnp.float32)
    if d_out != d_pad:
        ctx = ctx[:, :d_out]                          # drop zero padding in-kernel
    o_ref[...] = ctx.astype(o_ref.dtype)


def _attention_loop_kernel(x_ref, w_ref, b_ref, o_ref, qkv_ref, *,
                           n_batch, seq, d_pad, d_out, scale, mm_dtype):
    """Larger tiles: stage fused QKV in VMEM scratch, fori_loop over batches."""
    qkv_ref[...] = (
        jnp.dot(x_ref[...].astype(mm_dtype), w_ref[...].astype(mm_dtype),
                preferred_element_type=jnp.float32)
        + b_ref[...].astype(jnp.float32))

    def body(b, carry):
        r0 = b * seq
        if seq % 8 == 0:
            r0 = pl.multiple_of(r0, 8)
        blk = qkv_ref[pl.ds(r0, seq), :]              # (seq, 3*d_pad) f32, Ref slice
        qb = (blk[:, 0:d_pad] * jnp.float32(scale)).astype(mm_dtype)
        kb = blk[:, d_pad:2 * d_pad].astype(mm_dtype)
        vb = blk[:, 2 * d_pad:3 * d_pad].astype(mm_dtype)

        s = lax.dot_general(qb, kb, dimension_numbers=(((1,), (1,)), ((), ())),
                            preferred_element_type=jnp.float32)
        s = s - jnp.max(s, axis=-1, keepdims=True)
        p = jnp.exp(s)
        p = p * pl.reciprocal(jnp.sum(p, axis=-1, keepdims=True), approx=True)

        ctx = jnp.dot(p.astype(mm_dtype), vb, preferred_element_type=jnp.float32)
        if d_out != d_pad:
            ctx = ctx[:, :d_out]
        o_ref[pl.ds(r0, seq), :] = ctx.astype(o_ref.dtype)
        return carry

    lax.fori_loop(0, n_batch, body, 0)


def attention_pallas(x, w_fused, b_fused, d_out, *, batch_block=None,
                     max_blockdiag_rows=256):
    """x: (B, S, D_in) or (B, D_in); w_fused/b_fused from prepare_attention_params."""
    squeeze_2d = (x.ndim == 2)
    if squeeze_2d:
        x = x[None]                                   # torch 2-D case: rows attend to rows

    B, S, D_in = x.shape
    d_pad = w_fused.shape[1] // 3
    scale = 1.0 / (float(d_out) ** 0.5)               # scale uses the TRUE D_out
    itemsize = jnp.dtype(x.dtype).itemsize

    if batch_block is None:
        batch_block = _choose_batch_block(B, S, D_in, d_pad, d_out, itemsize,
                                          max_blockdiag_rows)
    assert B % batch_block == 0, "batch_block must divide the batch"
    rows = batch_block * S
    assert rows % 8 == 0 or batch_block == B, (
        "batch_block * seq must be a multiple of 8 (or cover the whole batch)")
    n_steps = B // batch_block

    blockdiag = (batch_block == 1) or (rows <= max_blockdiag_rows)
    mm_dtype = jnp.bfloat16 if x.dtype == jnp.bfloat16 else jnp.float32

    x2d = x.reshape(B * S, D_in)

    in_arrays = [x2d, w_fused, b_fused]
    in_specs = [
        pl.BlockSpec((rows, D_in), lambda i: (i, 0)),            # activations tile
        pl.BlockSpec((D_in, 3 * d_pad), lambda i: (0, 0)),       # fused W (grid-invariant)
        pl.BlockSpec((1, 3 * d_pad), lambda i: (0, 0)),          # fused bias
    ]
    scratch_shapes = []

    if blockdiag:
        if batch_block > 1:
            # Grid-invariant cross-batch mask bias (same layout every step).
            bid = jnp.repeat(jnp.arange(batch_block, dtype=jnp.int32), S)
            mask = jnp.where(bid[:, None] == bid[None, :], 0.0,
                             _MASK_NEG).astype(jnp.float32)
            in_arrays.append(mask)
            in_specs.append(pl.BlockSpec((rows, rows), lambda i: (0, 0)))
        kernel = functools.partial(
            _attention_blockdiag_kernel, n_batch=batch_block, d_pad=d_pad,
            d_out=d_out, scale=scale, mm_dtype=mm_dtype)
    else:
        kernel = functools.partial(
            _attention_loop_kernel, n_batch=batch_block, seq=S, d_pad=d_pad,
            d_out=d_out, scale=scale, mm_dtype=mm_dtype)
        scratch_shapes = [pltpu.VMEM((rows, 3 * d_pad), jnp.float32)]

    # Raise the scoped-VMEM limit only when the working set actually needs it
    # (keeps small configs portable across v5e/v6e/v7x defaults).
    est = _estimate_step_bytes(rows, S, D_in, d_pad, d_out, itemsize, blockdiag)
    vmem_limit = None
    if est > 12 * 1024 * 1024:
        vmem_limit = int(min(max(2 * est, 32 * 1024 * 1024), 56 * 1024 * 1024))

    out = pl.pallas_call(
        kernel,
        out_shape=jax.ShapeDtypeStruct((B * S, d_out), x.dtype),
        grid_spec=pltpu.PrefetchScalarGridSpec(
            num_scalar_prefetch=0,
            grid=(n_steps,),
            in_specs=in_specs,
            out_specs=pl.BlockSpec((rows, d_out), lambda i: (i, 0)),
            scratch_shapes=scratch_shapes,
        ),
        compiler_params=pltpu.CompilerParams(
            dimension_semantics=("parallel",),       # shard batch tiles across TCs (v7x)
            vmem_limit_bytes=vmem_limit),
    )(*in_arrays)

    out = out.reshape(B, S, d_out)
    return out[0] if squeeze_2d else out


def attention_ref(x, wq, bq, wk, bk, wv, bv):
    """Pure-JAX reference with the torch module's exact semantics (2-D or 3-D x)."""
    q = x @ wq + bq
    k = x @ wk + bk
    v = x @ wv + bv
    d = wq.shape[1]
    s = jnp.matmul(q, jnp.swapaxes(k, -1, -2)) / (d ** 0.5)
    p = jax.nn.softmax(s, axis=-1)
    return jnp.matmul(p, v)


if __name__ == "__main__":
    key = jax.random.PRNGKey(0)

    def make_linear(k, d_in, d_out):
        k1, k2 = jax.random.split(k)
        lim = 1.0 / (d_in ** 0.5)
        w = jax.random.uniform(k1, (d_in, d_out), jnp.float32, -lim, lim)
        b = jax.random.uniform(k2, (d_out,), jnp.float32, -lim, lim)
        return w, b

    def run_case(kparam, x, d_out, **kwargs):
        d_in = x.shape[-1]
        kq, kk, kv = jax.random.split(kparam, 3)
        wq, bq = make_linear(kq, d_in, d_out)
        wk, bk = make_linear(kk, d_in, d_out)
        wv, bv = make_linear(kv, d_in, d_out)
        w_f, b_f, d_o = prepare_attention_params(wq, bq, wk, bk, wv, bv)
        out = jax.block_until_ready(attention_pallas(x, w_f, b_f, d_o, **kwargs))
        ref = attention_ref(x, wq, bq, wk, bk, wv, bv)
        assert out.shape == ref.shape, (out.shape, ref.shape)
        assert jnp.allclose(out, ref, atol=1e-2, rtol=1e-2), ("mismatch", kwargs)

    k0, k1, kx0, kx1 = jax.random.split(key, 4)

    # Case 1: the shape the combined model actually feeds this block —
    # concatenated ViT+PointNet features (batch=2, 512) -> Attention(512, 512),
    # i.e. every batch row attends to every other row.
    x2d = jax.random.normal(kx0, (2, 512), dtype=jnp.float32)
    run_case(k0, x2d, 512)

    # Cases 2-4: generic small (B=2, S=8, D=32) attention exercising every path.
    x3d = jax.random.normal(kx1, (2, 8, 32), dtype=jnp.float32)
    run_case(k1, x3d, 32)                                          # auto tiling: 2 grid steps
    run_case(k1, x3d, 32, batch_block=2)                           # block-diag masked attention
    run_case(k1, x3d, 32, batch_block=2, max_blockdiag_rows=0)     # scratch + fori_loop path

    print("KERNEL_OK")
</pallas_src>

<mosaic_0001>
module attributes {stable_mosaic.version = 11 : i64} {
  func.func @_attention_blockdiag_kernel(%arg0: i32, %arg1: memref<2x512xf32, #tpu.memory_space<vmem>>, %arg2: memref<512x1536xf32, #tpu.memory_space<vmem>>, %arg3: memref<1x1536xf32, #tpu.memory_space<vmem>>, %arg4: memref<2x512xf32, #tpu.memory_space<vmem>>) attributes {dimension_semantics = [#tpu.dimension_semantics<parallel>], iteration_bounds = array<i64: 1>, scalar_prefetch = 0 : i64, scratch_operands = 0 : i64, tpu.core_type = #tpu.core_type<tc>, window_params = [{transform_indices = @transform_0, window_bounds = array<i64: 2, 512>}, {pipeline_mode = #tpu.pipeline_mode<synchronous>, transform_indices = @transform_1, window_bounds = array<i64: 512, 1536>}, {pipeline_mode = #tpu.pipeline_mode<synchronous>, transform_indices = @transform_2, window_bounds = array<i64: 1, 1536>}, {transform_indices = @transform_3, window_bounds = array<i64: 2, 512>}]} {
    %c0 = arith.constant 0 : index
    %c0_0 = arith.constant 0 : index
    %0 = vector.load %arg1[%c0, %c0_0] : memref<2x512xf32, #tpu.memory_space<vmem>>, vector<2x512xf32>
    %c0_1 = arith.constant 0 : index
    %c0_2 = arith.constant 0 : index
    %1 = vector.load %arg2[%c0_1, %c0_2] : memref<512x1536xf32, #tpu.memory_space<vmem>>, vector<512x1536xf32>
    %cst = arith.constant dense<0.000000e+00> : vector<2x1536xf32>
    %2 = tpu.matmul %0, %1, %cst {dimension_numbers = #tpu.dot_dimension_numbers<[1], [0], [0], [1], [0, 0, 1, 1], [], []>} : vector<2x512xf32>, vector<512x1536xf32>, vector<2x1536xf32> -> vector<2x1536xf32>
    %c0_3 = arith.constant 0 : index
    %c0_4 = arith.constant 0 : index
    %3 = vector.load %arg3[%c0_3, %c0_4] : memref<1x1536xf32, #tpu.memory_space<vmem>>, vector<1x1536xf32>
    %4 = vector.broadcast %3 : vector<1x1536xf32> to vector<2x1536xf32>
    %5 = arith.addf %2, %4 : vector<2x1536xf32>
    %6 = vector.extract_strided_slice %5 {offsets = [0, 0], sizes = [2, 512], strides = [1, 1]} : vector<2x1536xf32> to vector<2x512xf32>
    %cst_5 = arith.constant 0.0441941731 : f32
    %7 = vector.broadcast %cst_5 : f32 to vector<2x512xf32>
    %8 = arith.mulf %6, %7 : vector<2x512xf32>
    %9 = vector.extract_strided_slice %5 {offsets = [0, 512], sizes = [2, 512], strides = [1, 1]} : vector<2x1536xf32> to vector<2x512xf32>
    %10 = vector.extract_strided_slice %5 {offsets = [0, 1024], sizes = [2, 512], strides = [1, 1]} : vector<2x1536xf32> to vector<2x512xf32>
    %cst_6 = arith.constant dense<0.000000e+00> : vector<2x2xf32>
    %11 = tpu.matmul %8, %9, %cst_6 {dimension_numbers = #tpu.dot_dimension_numbers<[1], [1], [0], [0], [0, 0, 1, 0], [], []>} : vector<2x512xf32>, vector<2x512xf32>, vector<2x2xf32> -> vector<2x2xf32>
    %cst_7 = arith.constant dense<0xFF800000> : vector<2xf32>
    %12 = vector.multi_reduction <maximumf>, %11, %cst_7 [1] : vector<2x2xf32> to vector<2xf32>
    %13 = vector.shape_cast %12 : vector<2xf32> to vector<2x1xf32>
    %14 = vector.broadcast %13 : vector<2x1xf32> to vector<2x2xf32>
    %15 = arith.subf %11, %14 : vector<2x2xf32>
    %16 = math.exp %15 : vector<2x2xf32>
    %cst_8 = arith.constant dense<0.000000e+00> : vector<2xf32>
    %17 = vector.multi_reduction <add>, %16, %cst_8 [1] : vector<2x2xf32> to vector<2xf32>
    %18 = vector.shape_cast %17 : vector<2xf32> to vector<2x1xf32>
    %19 = tpu.reciprocal %18 {approx = true} : vector<2x1xf32> -> vector<2x1xf32>
    %20 = vector.broadcast %19 : vector<2x1xf32> to vector<2x2xf32>
    %21 = arith.mulf %16, %20 : vector<2x2xf32>
    %cst_9 = arith.constant dense<0.000000e+00> : vector<2x512xf32>
    %22 = tpu.matmul %21, %10, %cst_9 {dimension_numbers = #tpu.dot_dimension_numbers<[1], [0], [0], [1], [0, 0, 1, 1], [], []>} : vector<2x2xf32>, vector<2x512xf32>, vector<2x512xf32> -> vector<2x512xf32>
    %c0_10 = arith.constant 0 : index
    %c0_11 = arith.constant 0 : index
    %23 = vector.load %arg4[%c0_10, %c0_11] : memref<2x512xf32, #tpu.memory_space<vmem>>, vector<2x512xf32>
    tpu.vector_store %arg4[%c0_10, %c0_11], %22 {strides = array<i32>} : memref<2x512xf32, #tpu.memory_space<vmem>>, vector<2x512xf32>,
    return
  }
  func.func @transform_0(%arg0: i32) -> (i32, i32) {
    %c0_i32 = arith.constant 0 : i32
    %c0_i32_0 = arith.constant 0 : i32
    return %arg0, %c0_i32 : i32, i32
  }
  func.func @transform_1(%arg0: i32) -> (i32, i32) {
    %c0_i32 = arith.constant 0 : i32
    %c0_i32_0 = arith.constant 0 : i32
    %c0_i32_1 = arith.constant 0 : i32
    return %c0_i32, %c0_i32_0 : i32, i32
  }
  func.func @transform_2(%arg0: i32) -> (i32, i32) {
    %c0_i32 = arith.constant 0 : i32
    %c0_i32_0 = arith.constant 0 : i32
    %c0_i32_1 = arith.constant 0 : i32
    return %c0_i32, %c0_i32_0 : i32, i32
  }
  func.func @transform_3(%arg0: i32) -> (i32, i32) {
    %c0_i32 = arith.constant 0 : i32
    %c0_i32_0 = arith.constant 0 : i32
    return %arg0, %c0_i32 : i32, i32
  }
}

</mosaic_0001>

<bundles_post_ra>
// kernel: tpu_custom_call.1
= control target key start
LH: loop header
LB: loop body
LE: loop exit
PB: predicated region body
PF: predicated region fallthrough
CT: control target
= control target key end

     0   :  { %8 = vsyncpa [#allocation3], 0  ;;  %s2375_s0 = inlined_call_operand.hbm [shape: f32[2,512], index: 0, kind: input, shape index: {}]   ;;  %s2376_s1 = inlined_call_operand.hbm [shape: f32[512,1536], index: 1, kind: input, shape index: {}]   ;;  %s2377_s2 = inlined_call_operand.hbm [shape: f32[1,1536], index: 2, kind: input, shape index: {}]   ;;  %s2378_s3 = inlined_call_operand.hbm [shape: f32[2,512], index: 3, kind: output, shape index: {}]  }
   0x1   :  { %9 = vsyncpa [#allocation6], 0  ;;  %s26_s14 = sshll.u32 %s2376_s1, 4  ;;  %s27_s14 = int_to_ptr.hbm [resolvable:$true] %s26_s14 }
   0x2   :  { %10 = vsyncpa [#allocation4], 0  ;;  %s2178_s15 = smov [#allocation5]   ;;  %s16_s19 = sshll.u32 %s2375_s0, 4  ;;  %s17_s19 = int_to_ptr.hbm [resolvable:$true] %s16_s19 }
   0x3   :  { %s28_s16 = sshll.u32 %s2178_s15, 4  ;;  %s2179_s20 = smov 1536   ;;  %s29_s16 = int_to_ptr.vmem [resolvable:$true] %s28_s16 }
   0x4   :  { %s2180_s21 = smov 96   ;;  %s2181_s22 = smov [#allocation2]  }
   0x5   :  { %34 = dma.hbm_to_vmem [thread:$0]  %s27_s14, 98304, %s29_s16, [#allocation6], %s2179_s20, %s2179_s20, %s2180_s21  }
   0x6   :  { %s18_s23 = sshll.u32 %s2181_s22, 4  ;;  %s40_s26 = sshll.u32 %s2377_s2, 4  ;;  %s19_s23 = int_to_ptr.vmem [resolvable:$true] %s18_s23  ;;  %s41_s26 = int_to_ptr.hbm [resolvable:$true] %s40_s26 }
   0x7   :  { %21 = dma.hbm_to_vmem [thread:$0]  %s17_s19, 128, %s19_s23, [#allocation3]  }
   0x8   :  { %s2182_s1 = smov [#allocation7]  }
   0x9   :  { %s42_s27 = sshll.u32 %s2182_s1, 4  ;;  %s43_s27 = int_to_ptr.vmem [resolvable:$true] %s42_s27 }
   0xa   :  { %45 = dma.hbm_to_vmem [thread:$0]  %s41_s26, 192, %s43_s27, [#allocation6]  }
   0xb   :  { %2172 = dma.done.wait [#allocation3], 128  }
   0xc   :  { %2173 = vsyncadd [#allocation3], 4294967168 }
   0xd   :  { %2174 = dma.done.wait [#allocation6], 98496  }
   0xe   :  { %2175 = vsyncadd [#allocation6], 4294868800  ;;  %v239_v0 = vld [vmem:[#allocation5 + $0x5a0] sm:$0xff]  ;;  %v240_v63 = vld [vmem:[#allocation5 + $0x5a8] sm:$0xff]  ;;  %vm1925_vm0 = vcmask 1041408   ;;  %vm1909_vm1 = vcmask 9216  }
   0xf   :  { %v431_v1 = vld [vmem:[#allocation5 + $0xba0] sm:$0xff]  ;;  %865 = vmatpush.msra.mxu0 %v239_v0  ;;  %v432_v0 = vld [vmem:[#allocation5 + $0xba8] sm:$0xff]  ;;  %vm1921_vm2 = vcmask 15360   ;;  %vm2026_vm3 = vcmask 1045508   ;;  %s2183_s0 = smov [#allocation8]   ;;  %s2039_s30 = sshll.u32 %s2378_s3, 4  ;;  %s2040_s30 = int_to_ptr.hbm [resolvable:$true] %s2039_s30 }
  0x10   :  { %v623_v2 = vld [vmem:[#allocation5 + $0x11a0] sm:$0xff]  ;;  %885 = vmatpush.msra.mxu1 %v431_v1  ;;  %v624_v1 = vld [vmem:[#allocation5 + $0x11a8] sm:$0xff]  ;;  %s2037_s2 = sshll.u32 %s2183_s0, 4  ;;  %vm2028_vm4 = vcmask 1043456   ;;  %s2038_s2 = int_to_ptr.vmem [resolvable:$true] %s2037_s2 }
  0x11   :  { %v227_v3 = vld [vmem:[#allocation5 + $0x540] sm:$0xff]  ;;  %905 = vmatpush.msra.mxu2 %v623_v2 }
  0x12   :  { %v419_v4 = vld [vmem:[#allocation5 + $0xb40] sm:$0xff]  ;;  %866 = vmatpush.msra.mxu0 %v227_v3  ;;  %v228_v3 = vld [vmem:[#allocation5 + $0x548] sm:$0xff] }
  0x13   :  { %v611_v5 = vld [vmem:[#allocation5 + $0x1140] sm:$0xff]  ;;  %886 = vmatpush.msra.mxu1 %v419_v4  ;;  %v420_v4 = vld [vmem:[#allocation5 + $0xb48] sm:$0xff] }
  0x14   :  { %v815_v6 = vld [vmem:[#allocation5 + $0x17a0] sm:$0xff]  ;;  %906 = vmatpush.msra.mxu2 %v611_v5  ;;  %v612_v5 = vld [vmem:[#allocation5 + $0x1148] sm:$0xff] }
  0x15   :  { %v215_v7 = vld [vmem:[#allocation5 + $0x4e0] sm:$0xff]  ;;  %925 = vmatpush.msra.mxu3 %v815_v6  ;;  %v816_v6 = vld [vmem:[#allocation5 + $0x17a8] sm:$0xff] }
  0x16   :  { %v407_v8 = vld [vmem:[#allocation5 + $0xae0] sm:$0xff]  ;;  %867 = vmatpush.msra.mxu0 %v215_v7  ;;  %v216_v7 = vld [vmem:[#allocation5 + $0x4e8] sm:$0xff] }
  0x17   :  { %v599_v9 = vld [vmem:[#allocation5 + $0x10e0] sm:$0xff]  ;;  %887 = vmatpush.msra.mxu1 %v407_v8  ;;  %v408_v8 = vld [vmem:[#allocation5 + $0xae8] sm:$0xff] }
  0x18   :  { %v803_v10 = vld [vmem:[#allocation5 + $0x1740] sm:$0xff]  ;;  %907 = vmatpush.msra.mxu2 %v599_v9  ;;  %v600_v9 = vld [vmem:[#allocation5 + $0x10e8] sm:$0xff] }
  0x19   :  { %v203_v11 = vld [vmem:[#allocation5 + $0x480] sm:$0xff]  ;;  %926 = vmatpush.msra.mxu3 %v803_v10  ;;  %v804_v10 = vld [vmem:[#allocation5 + $0x1748] sm:$0xff] }
  0x1a   :  { %v395_v12 = vld [vmem:[#allocation5 + $0xa80] sm:$0xff]  ;;  %868 = vmatpush.msra.mxu0 %v203_v11  ;;  %v204_v11 = vld [vmem:[#allocation5 + $0x488] sm:$0xff] }
  0x1b   :  { %v587_v13 = vld [vmem:[#allocation5 + $0x1080] sm:$0xff]  ;;  %888 = vmatpush.msra.mxu1 %v395_v12  ;;  %v396_v12 = vld [vmem:[#allocation5 + $0xa88] sm:$0xff] }
  0x1c   :  { %v791_v14 = vld [vmem:[#allocation5 + $0x16e0] sm:$0xff]  ;;  %908 = vmatpush.msra.mxu2 %v587_v13  ;;  %v588_v13 = vld [vmem:[#allocation5 + $0x1088] sm:$0xff] }
  0x1d   :  { %v191_v15 = vld [vmem:[#allocation5 + $0x420] sm:$0xff]  ;;  %927 = vmatpush.msra.mxu3 %v791_v14  ;;  %v792_v14 = vld [vmem:[#allocation5 + $0x16e8] sm:$0xff] }
  0x1e   :  { %v383_v16 = vld [vmem:[#allocation5 + $0xa20] sm:$0xff]  ;;  %869 = vmatpush.msra.mxu0 %v191_v15  ;;  %v192_v15 = vld [vmem:[#allocation5 + $0x428] sm:$0xff] }
  0x1f   :  { %v575_v17 = vld [vmem:[#allocation5 + $0x1020] sm:$0xff]  ;;  %889 = vmatpush.msra.mxu1 %v383_v16  ;;  %v384_v16 = vld [vmem:[#allocation5 + $0xa28] sm:$0xff] }
  0x20   :  { %v779_v18 = vld [vmem:[#allocation5 + $0x1680] sm:$0xff]  ;;  %909 = vmatpush.msra.mxu2 %v575_v17  ;;  %v576_v17 = vld [vmem:[#allocation5 + $0x1028] sm:$0xff] }
  0x21   :  { %v179_v19 = vld [vmem:[#allocation5 + $0x3c0] sm:$0xff]  ;;  %928 = vmatpush.msra.mxu3 %v779_v18  ;;  %v780_v18 = vld [vmem:[#allocation5 + $0x1688] sm:$0xff] }
  0x22   :  { %v371_v20 = vld [vmem:[#allocation5 + $0x9c0] sm:$0xff]  ;;  %870 = vmatpush.msra.mxu0 %v179_v19  ;;  %v180_v19 = vld [vmem:[#allocation5 + $0x3c8] sm:$0xff] }
  0x23   :  { %v563_v21 = vld [vmem:[#allocation5 + $0xfc0] sm:$0xff]  ;;  %890 = vmatpush.msra.mxu1 %v371_v20  ;;  %v372_v20 = vld [vmem:[#allocation5 + $0x9c8] sm:$0xff] }
  0x24   :  { %v767_v22 = vld [vmem:[#allocation5 + $0x1620] sm:$0xff]  ;;  %910 = vmatpush.msra.mxu2 %v563_v21  ;;  %v564_v21 = vld [vmem:[#allocation5 + $0xfc8] sm:$0xff] }
  0x25   :  { %v167_v23 = vld [vmem:[#allocation5 + $0x360] sm:$0xff]  ;;  %929 = vmatpush.msra.mxu3 %v767_v22  ;;  %v768_v22 = vld [vmem:[#allocation5 + $0x1628] sm:$0xff] }
  0x26   :  { %v359_v24 = vld [vmem:[#allocation5 + $0x960] sm:$0xff]  ;;  %871 = vmatpush.msra.mxu0 %v167_v23  ;;  %v168_v23 = vld [vmem:[#allocation5 + $0x368] sm:$0xff] }
  0x27   :  { %v551_v25 = vld [vmem:[#allocation5 + $0xf60] sm:$0xff]  ;;  %891 = vmatpush.msra.mxu1 %v359_v24  ;;  %v360_v24 = vld [vmem:[#allocation5 + $0x968] sm:$0xff] }
  0x28   :  { %v755_v26 = vld [vmem:[#allocation5 + $0x15c0] sm:$0xff]  ;;  %911 = vmatpush.msra.mxu2 %v551_v25  ;;  %v58_v25 = vld [vmem:[#allocation2] sm:$0xff] }
  0x29   :  { %v155_v27 = vld [vmem:[#allocation5 + $0x300] sm:$0xff]  ;;  %930 = vmatpush.msra.mxu3 %v755_v26  ;;  %v552_v26 = vld [vmem:[#allocation5 + $0xf68] sm:$0xff]  ;;  %856 = vst [vmem:[#allocation1] ss:$4 sm:$0xff] %v58_v25  ;;  %v373_v25 = vld [vmem:[#allocation5 + $0x9d0] sm:$0xff] }
  0x2a   :  { %v347_v28 = vld [vmem:[#allocation5 + $0x900] sm:$0xff]  ;;  %872 = vmatpush.msra.mxu0 %v155_v27  ;;  %v756_v27 = vld [vmem:[#allocation5 + $0x15c8] sm:$0xff] }
  0x2b   :  { %v539_v29 = vld [vmem:[#allocation5 + $0xf00] sm:$0xff]  ;;  %892 = vmatpush.msra.mxu1 %v347_v28  ;;  %v156_v28 = vld [vmem:[#allocation5 + $0x308] sm:$0xff] }
  0x2c   :  { %v743_v30 = vld [vmem:[#allocation5 + $0x1560] sm:$0xff]  ;;  %912 = vmatpush.msra.mxu2 %v539_v29  ;;  %v348_v29 = vld [vmem:[#allocation5 + $0x908] sm:$0xff] }
  0x2d   :  { %v143_v31 = vld [vmem:[#allocation5 + $0x2a0] sm:$0xff]  ;;  %931 = vmatpush.msra.mxu3 %v743_v30  ;;  %v540_v30 = vld [vmem:[#allocation5 + $0xf08] sm:$0xff] }
  0x2e   :  { %v335_v32 = vld [vmem:[#allocation5 + $0x8a0] sm:$0xff]  ;;  %873 = vmatpush.msra.mxu0 %v143_v31  ;;  %v744_v31 = vld [vmem:[#allocation5 + $0x1568] sm:$0xff] }
  0x2f   :  { %v527_v33 = vld [vmem:[#allocation5 + $0xea0] sm:$0xff]  ;;  %893 = vmatpush.msra.mxu1 %v335_v32  ;;  %v144_v32 = vld [vmem:[#allocation5 + $0x2a8] sm:$0xff] }
  0x30   :  { %v731_v34 = vld [vmem:[#allocation5 + $0x1500] sm:$0xff]  ;;  %913 = vmatpush.msra.mxu2 %v527_v33  ;;  %v336_v33 = vld [vmem:[#allocation5 + $0x8a8] sm:$0xff] }
  0x31   :  { %v131_v35 = vld [vmem:[#allocation5 + $0x240] sm:$0xff]  ;;  %932 = vmatpush.msra.mxu3 %v731_v34  ;;  %v528_v34 = vld [vmem:[#allocation5 + $0xea8] sm:$0xff] }
  0x32   :  { %v323_v36 = vld [vmem:[#allocation5 + $0x840] sm:$0xff]  ;;  %874 = vmatpush.msra.mxu0 %v131_v35  ;;  %v732_v35 = vld [vmem:[#allocation5 + $0x1508] sm:$0xff] }
  0x33   :  { %v515_v37 = vld [vmem:[#allocation5 + $0xe40] sm:$0xff]  ;;  %894 = vmatpush.msra.mxu1 %v323_v36  ;;  %v132_v36 = vld [vmem:[#allocation5 + $0x248] sm:$0xff] }
  0x34   :  { %v719_v38 = vld [vmem:[#allocation5 + $0x14a0] sm:$0xff]  ;;  %914 = vmatpush.msra.mxu2 %v515_v37  ;;  %v324_v37 = vld [vmem:[#allocation5 + $0x848] sm:$0xff] }
  0x35   :  { %v119_v39 = vld [vmem:[#allocation5 + $0x1e0] sm:$0xff]  ;;  %933 = vmatpush.msra.mxu3 %v719_v38  ;;  %v516_v38 = vld [vmem:[#allocation5 + $0xe48] sm:$0xff] }
  0x36   :  { %v311_v40 = vld [vmem:[#allocation5 + $0x7e0] sm:$0xff]  ;;  %875 = vmatpush.msra.mxu0 %v119_v39  ;;  %v720_v39 = vld [vmem:[#allocation5 + $0x14a8] sm:$0xff] }
  0x37   :  { %v503_v41 = vld [vmem:[#allocation5 + $0xde0] sm:$0xff]  ;;  %895 = vmatpush.msra.mxu1 %v311_v40  ;;  %v120_v40 = vld [vmem:[#allocation5 + $0x1e8] sm:$0xff] }
  0x38   :  { %v707_v42 = vld [vmem:[#allocation5 + $0x1440] sm:$0xff]  ;;  %915 = vmatpush.msra.mxu2 %v503_v41  ;;  %v312_v41 = vld [vmem:[#allocation5 + $0x7e8] sm:$0xff] }
  0x39   :  { %v107_v43 = vld [vmem:[#allocation5 + $0x180] sm:$0xff]  ;;  %934 = vmatpush.msra.mxu3 %v707_v42  ;;  %v504_v42 = vld [vmem:[#allocation5 + $0xde8] sm:$0xff] }
  0x3a   :  { %v299_v44 = vld [vmem:[#allocation5 + $0x780] sm:$0xff]  ;;  %876 = vmatpush.msra.mxu0 %v107_v43  ;;  %v708_v43 = vld [vmem:[#allocation5 + $0x1448] sm:$0xff] }
  0x3b   :  { %v491_v45 = vld [vmem:[#allocation5 + $0xd80] sm:$0xff]  ;;  %896 = vmatpush.msra.mxu1 %v299_v44  ;;  %v108_v44 = vld [vmem:[#allocation5 + $0x188] sm:$0xff] }
  0x3c   :  { %v695_v46 = vld [vmem:[#allocation5 + $0x13e0] sm:$0xff]  ;;  %916 = vmatpush.msra.mxu2 %v491_v45  ;;  %v300_v45 = vld [vmem:[#allocation5 + $0x788] sm:$0xff] }
  0x3d   :  { %v95_v47 = vld [vmem:[#allocation5 + $0x120] sm:$0xff]  ;;  %935 = vmatpush.msra.mxu3 %v695_v46  ;;  %v492_v46 = vld [vmem:[#allocation5 + $0xd88] sm:$0xff] }
  0x3e   :  { %v287_v48 = vld [vmem:[#allocation5 + $0x720] sm:$0xff]  ;;  %877 = vmatpush.msra.mxu0 %v95_v47  ;;  %v696_v47 = vld [vmem:[#allocation5 + $0x13e8] sm:$0xff] }
  0x3f   :  { %v479_v49 = vld [vmem:[#allocation5 + $0xd20] sm:$0xff]  ;;  %897 = vmatpush.msra.mxu1 %v287_v48  ;;  %v96_v48 = vld [vmem:[#allocation5 + $0x128] sm:$0xff] }
  0x40   :  { %v683_v50 = vld [vmem:[#allocation5 + $0x1380] sm:$0xff]  ;;  %917 = vmatpush.msra.mxu2 %v479_v49  ;;  %v288_v49 = vld [vmem:[#allocation5 + $0x728] sm:$0xff] }
  0x41   :  { %v83_v51 = vld [vmem:[#allocation5 + $0xc0] sm:$0xff]  ;;  %936 = vmatpush.msra.mxu3 %v683_v50  ;;  %v480_v50 = vld [vmem:[#allocation5 + $0xd28] sm:$0xff] }
  0x42   :  { %v275_v52 = vld [vmem:[#allocation5 + $0x6c0] sm:$0xff]  ;;  %878 = vmatpush.msra.mxu0 %v83_v51  ;;  %v684_v51 = vld [vmem:[#allocation5 + $0x1388] sm:$0xff] }
  0x43   :  { %v467_v53 = vld [vmem:[#allocation5 + $0xcc0] sm:$0xff]  ;;  %898 = vmatpush.msra.mxu1 %v275_v52  ;;  %v84_v52 = vld [vmem:[#allocation5 + $0xc8] sm:$0xff] }
  0x44   :  { %v671_v54 = vld [vmem:[#allocation5 + $0x1320] sm:$0xff]  ;;  %918 = vmatpush.msra.mxu2 %v467_v53  ;;  %v276_v53 = vld [vmem:[#allocation5 + $0x6c8] sm:$0xff] }
  0x45   :  { %v71_v55 = vld [vmem:[#allocation5 + $0x60] sm:$0xff]  ;;  %937 = vmatpush.msra.mxu3 %v671_v54  ;;  %v468_v54 = vld [vmem:[#allocation5 + $0xcc8] sm:$0xff] }
  0x46   :  { %v263_v56 = vld [vmem:[#allocation5 + $0x660] sm:$0xff]  ;;  %879 = vmatpush.msra.mxu0 %v71_v55  ;;  %v672_v55 = vld [vmem:[#allocation5 + $0x1328] sm:$0xff] }
  0x47   :  { %v455_v57 = vld [vmem:[#allocation5 + $0xc60] sm:$0xff]  ;;  %899 = vmatpush.msra.mxu1 %v263_v56  ;;  %v72_v56 = vld [vmem:[#allocation5 + $0x68] sm:$0xff] }
  0x48   :  { %v659_v58 = vld [vmem:[#allocation5 + $0x12c0] sm:$0xff]  ;;  %919 = vmatpush.msra.mxu2 %v455_v57  ;;  %v264_v57 = vld [vmem:[#allocation5 + $0x668] sm:$0xff] }
  0x49   :  { %v59_v59 = vld [vmem:[#allocation5] sm:$0xff]  ;;  %938 = vmatpush.msra.mxu3 %v659_v58  ;;  %v456_v58 = vld [vmem:[#allocation5 + $0xc68] sm:$0xff] }
  0x4a   :  { %v251_v60 = vld [vmem:[#allocation5 + $0x600] sm:$0xff]  ;;  %880 = vmatpush.msra.mxu0 %v59_v59  ;;  %v660_v59 = vld [vmem:[#allocation5 + $0x12c8] sm:$0xff] }
  0x4b   :  { %v443_v61 = vld [vmem:[#allocation5 + $0xc00] sm:$0xff]  ;;  %900 = vmatpush.msra.mxu1 %v251_v60  ;;  %v60_v60 = vld [vmem:[#allocation5 + $0x8] sm:$0xff] }
  0x4c   :  { %v647_v62 = vld [vmem:[#allocation5 + $0x1260] sm:$0xff]  ;;  %920 = vmatpush.msra.mxu2 %v443_v61  ;;  %945 = vmatpush.msrb.mxu0 %v240_v63  ;;  %v252_v61 = vld [vmem:[#allocation5 + $0x608] sm:$0xff] }
  0x4d   :  { %v635_v2 = vld [vmem:[#allocation5 + $0x1200] sm:$0xff]  ;;  %939 = vmatpush.msra.mxu3 %v647_v62  ;;  %965 = vmatpush.msrb.mxu1 %v432_v0  ;;  %v444_v62 = vld [vmem:[#allocation5 + $0xc08] sm:$0xff]  ;;  %v2213_v0 = vld.sshfl [vmem:[#allocation1] sm:$0xff pattern:$0x73625140] }
  0x4e   :  { %985 = vmatpush.msrb.mxu2 %v624_v1  ;;  %946 = vmatpush.msrb.mxu0 %v228_v3  ;;  %v648_v63 = vld [vmem:[#allocation5 + $0x1268] sm:$0xff]  ;;  %v2215_v1 = vld.sshfl [vmem:[#allocation1 + $0x8] sm:$0xff pattern:$0x73625140]  ;;  %v241_v3 = vld [vmem:[#allocation5 + $0x5b0] sm:$0xff] }
  0x4f   :  { %940 = vmatpush.msra.mxu3 %v635_v2  ;;  %966 = vmatpush.msrb.mxu1 %v420_v4  ;;  %v2217_v2 = vld.sshfl [vmem:[#allocation1 + $0x10] sm:$0xff pattern:$0x73625140]  ;;  %v433_v4 = vld [vmem:[#allocation5 + $0xbb0] sm:$0xff] }
  0x50   :  { %986 = vmatpush.msrb.mxu2 %v612_v5  ;;  %947 = vmatpush.msrb.mxu0 %v216_v7  ;;  %v625_v5 = vld [vmem:[#allocation5 + $0x11b0] sm:$0xff] }
  0x51   :  { %1005 = vmatpush.msrb.mxu3 %v816_v6  ;;  %967 = vmatpush.msrb.mxu1 %v408_v8  ;;  %v636_v6 = vld [vmem:[#allocation5 + $0x1208] sm:$0xff]  ;;  %v229_v7 = vld [vmem:[#allocation5 + $0x550] sm:$0xff] }
  0x52   :  { %987 = vmatpush.msrb.mxu2 %v600_v9  ;;  %948 = vmatpush.msrb.mxu0 %v204_v11  ;;  %v2222_v8 = vld.sshfl [vmem:[#allocation1 + $0x18] sm:$0xff pattern:$0x73625140]  ;;  %v421_v9 = vld [vmem:[#allocation5 + $0xb50] sm:$0xff] }
  0x53   :  { %1006 = vmatpush.msrb.mxu3 %v804_v10  ;;  %968 = vmatpush.msrb.mxu1 %v396_v12  ;;  %v613_v10 = vld [vmem:[#allocation5 + $0x1150] sm:$0xff] }
  0x54   :  { %988 = vmatpush.msrb.mxu2 %v588_v13  ;;  %949 = vmatpush.msrb.mxu0 %v192_v15  ;;  %v817_v11 = vld [vmem:[#allocation5 + $0x17b0] sm:$0xff] }
  0x55   :  { %1007 = vmatpush.msrb.mxu3 %v792_v14  ;;  %969 = vmatpush.msrb.mxu1 %v384_v16  ;;  %v217_v12 = vld [vmem:[#allocation5 + $0x4f0] sm:$0xff] }
  0x56   :  { %989 = vmatpush.msrb.mxu2 %v576_v17  ;;  %950 = vmatpush.msrb.mxu0 %v180_v19  ;;  %v409_v13 = vld [vmem:[#allocation5 + $0xaf0] sm:$0xff] }
  0x57   :  { %1008 = vmatpush.msrb.mxu3 %v780_v18  ;;  %970 = vmatpush.msrb.mxu1 %v372_v20  ;;  %v601_v14 = vld [vmem:[#allocation5 + $0x10f0] sm:$0xff] }
  0x58   :  { %990 = vmatpush.msrb.mxu2 %v564_v21  ;;  %951 = vmatpush.msrb.mxu0 %v168_v23  ;;  %v805_v15 = vld [vmem:[#allocation5 + $0x1750] sm:$0xff] }
  0x59   :  { %1009 = vmatpush.msrb.mxu3 %v768_v22  ;;  %971 = vmatpush.msrb.mxu1 %v360_v24  ;;  %v205_v16 = vld [vmem:[#allocation5 + $0x490] sm:$0xff] }
  0x5a   :  { %991 = vmatpush.msrb.mxu2 %v552_v26  ;;  %952 = vmatpush.msrb.mxu0 %v156_v28  ;;  %v397_v17 = vld [vmem:[#allocation5 + $0xa90] sm:$0xff] }
  0x5b   :  { %1010 = vmatpush.msrb.mxu3 %v756_v27  ;;  %972 = vmatpush.msrb.mxu1 %v348_v29  ;;  %v589_v18 = vld [vmem:[#allocation5 + $0x1090] sm:$0xff] }
  0x5c   :  { %992 = vmatpush.msrb.mxu2 %v540_v30  ;;  %953 = vmatpush.msrb.mxu0 %v144_v32  ;;  %v793_v19 = vld [vmem:[#allocation5 + $0x16f0] sm:$0xff] }
  0x5d   :  { %1011 = vmatpush.msrb.mxu3 %v744_v31  ;;  %973 = vmatpush.msrb.mxu1 %v336_v33  ;;  %v193_v20 = vld [vmem:[#allocation5 + $0x430] sm:$0xff] }
  0x5e   :  { %993 = vmatpush.msrb.mxu2 %v528_v34  ;;  %954 = vmatpush.msrb.mxu0 %v132_v36  ;;  %v385_v21 = vld [vmem:[#allocation5 + $0xa30] sm:$0xff] }
  0x5f   :  { %1012 = vmatpush.msrb.mxu3 %v732_v35  ;;  %974 = vmatpush.msrb.mxu1 %v324_v37  ;;  %v577_v22 = vld [vmem:[#allocation5 + $0x1030] sm:$0xff] }
  0x60   :  { %994 = vmatpush.msrb.mxu2 %v516_v38  ;;  %955 = vmatpush.msrb.mxu0 %v120_v40  ;;  %v781_v23 = vld [vmem:[#allocation5 + $0x1690] sm:$0xff] }
  0x61   :  { %1013 = vmatpush.msrb.mxu3 %v720_v39  ;;  %975 = vmatpush.msrb.mxu1 %v312_v41  ;;  %v181_v24 = vld [vmem:[#allocation5 + $0x3d0] sm:$0xff] }
  0x62   :  { %995 = vmatpush.msrb.mxu2 %v504_v42  ;;  %956 = vmatpush.msrb.mxu0 %v108_v44  ;;  %v565_v26 = vld [vmem:[#allocation5 + $0xfd0] sm:$0xff] }
  0x63   :  { %1014 = vmatpush.msrb.mxu3 %v708_v43  ;;  %976 = vmatpush.msrb.mxu1 %v300_v45  ;;  %v769_v27 = vld [vmem:[#allocation5 + $0x1630] sm:$0xff] }
  0x64   :  { %996 = vmatpush.msrb.mxu2 %v492_v46  ;;  %957 = vmatpush.msrb.mxu0 %v96_v48  ;;  %v169_v28 = vld [vmem:[#allocation5 + $0x370] sm:$0xff] }
  0x65   :  { %1015 = vmatpush.msrb.mxu3 %v696_v47  ;;  %977 = vmatpush.msrb.mxu1 %v288_v49  ;;  %v361_v29 = vld [vmem:[#allocation5 + $0x970] sm:$0xff] }
  0x66   :  { %997 = vmatpush.msrb.mxu2 %v480_v50  ;;  %958 = vmatpush.msrb.mxu0 %v84_v52  ;;  %v553_v30 = vld [vmem:[#allocation5 + $0xf70] sm:$0xff] }
  0x67   :  { %1016 = vmatpush.msrb.mxu3 %v684_v51  ;;  %978 = vmatpush.msrb.mxu1 %v276_v53  ;;  %v757_v31 = vld [vmem:[#allocation5 + $0x15d0] sm:$0xff] }
  0x68   :  { %998 = vmatpush.msrb.mxu2 %v468_v54  ;;  %959 = vmatpush.msrb.mxu0 %v72_v56  ;;  %v157_v32 = vld [vmem:[#allocation5 + $0x310] sm:$0xff] }
  0x69   :  { %1017 = vmatpush.msrb.mxu3 %v672_v55  ;;  %979 = vmatpush.msrb.mxu1 %v264_v57  ;;  %v349_v33 = vld [vmem:[#allocation5 + $0x910] sm:$0xff] }
  0x6a   :  { %999 = vmatpush.msrb.mxu2 %v456_v58  ;;  %960 = vmatpush.msrb.mxu0 %v60_v60  ;;  %v541_v34 = vld [vmem:[#allocation5 + $0xf10] sm:$0xff] }
  0x6b   :  { %1018 = vmatpush.msrb.mxu3 %v660_v59  ;;  %980 = vmatpush.msrb.mxu1 %v252_v61  ;;  %v745_v35 = vld [vmem:[#allocation5 + $0x1570] sm:$0xff] }
  0x6c   :  { %1000 = vmatpush.msrb.mxu2 %v444_v62  ;;  %881 = vmatmul.f32.vlgmr.msra.gmra.mxu0 %v2213_v0  ;;  %v145_v36 = vld [vmem:[#allocation5 + $0x2b0] sm:$0xff] }
  0x6d   :  { %1019 = vmatpush.msrb.mxu3 %v648_v63  ;;  %901 = vmatmul.f32.vlgmr.msra.gmra.mxu1 %v2215_v1  ;;  %v337_v37 = vld [vmem:[#allocation5 + $0x8b0] sm:$0xff] }
  0x6e   :  { %921 = vmatmul.f32.vlgmr.msra.gmra.mxu2 %v2217_v2  ;;  %1025 = vmatpush.msra.mxu0 %v241_v3  ;;  %v529_v38 = vld [vmem:[#allocation5 + $0xeb0] sm:$0xff] }
  0x6f   :  { %1045 = vmatpush.msra.mxu1 %v433_v4  ;;  %1065 = vmatpush.msra.mxu2 %v625_v5  ;;  %v733_v39 = vld [vmem:[#allocation5 + $0x1510] sm:$0xff] }
  0x70   :  { %1020 = vmatpush.msrb.mxu3 %v636_v6  ;;  %1026 = vmatpush.msra.mxu0 %v229_v7  ;;  %v133_v40 = vld [vmem:[#allocation5 + $0x250] sm:$0xff]  ;;  %v242_v7 = vld [vmem:[#allocation5 + $0x5b8] sm:$0xff] }
  0x71   :  { %941 = vmatmul.f32.vlgmr.msra.gmra.mxu3 %v2222_v8  ;;  %1046 = vmatpush.msra.mxu1 %v421_v9  ;;  %v325_v41 = vld [vmem:[#allocation5 + $0x850] sm:$0xff]  ;;  %v434_v9 = vld [vmem:[#allocation5 + $0xbb8] sm:$0xff] }
  0x72   :  { %1066 = vmatpush.msra.mxu2 %v613_v10  ;;  %1085 = vmatpush.msra.mxu3 %v817_v11  ;;  %v517_v42 = vld [vmem:[#allocation5 + $0xe50] sm:$0xff]  ;;  %v626_v10 = vld [vmem:[#allocation5 + $0x11b8] sm:$0xff] }
  0x73   :  { %1027 = vmatpush.msra.mxu0 %v217_v12  ;;  %1047 = vmatpush.msra.mxu1 %v409_v13  ;;  %v721_v43 = vld [vmem:[#allocation5 + $0x14b0] sm:$0xff]  ;;  %v230_v12 = vld [vmem:[#allocation5 + $0x558] sm:$0xff] }
  0x74   :  { %1067 = vmatpush.msra.mxu2 %v601_v14  ;;  %1086 = vmatpush.msra.mxu3 %v805_v15  ;;  %v121_v44 = vld [vmem:[#allocation5 + $0x1f0] sm:$0xff]  ;;  %v422_v13 = vld [vmem:[#allocation5 + $0xb58] sm:$0xff] }
  0x75   :  { %1028 = vmatpush.msra.mxu0 %v205_v16  ;;  %1048 = vmatpush.msra.mxu1 %v397_v17  ;;  %v313_v45 = vld [vmem:[#allocation5 + $0x7f0] sm:$0xff]  ;;  %v614_v14 = vld [vmem:[#allocation5 + $0x1158] sm:$0xff] }
  0x76   :  { %1068 = vmatpush.msra.mxu2 %v589_v18  ;;  %1087 = vmatpush.msra.mxu3 %v793_v19  ;;  %v505_v46 = vld [vmem:[#allocation5 + $0xdf0] sm:$0xff]  ;;  %v818_v15 = vld [vmem:[#allocation5 + $0x17b8] sm:$0xff] }
  0x77   :  { %1029 = vmatpush.msra.mxu0 %v193_v20  ;;  %1049 = vmatpush.msra.mxu1 %v385_v21  ;;  %v709_v47 = vld [vmem:[#allocation5 + $0x1450] sm:$0xff]  ;;  %v218_v16 = vld [vmem:[#allocation5 + $0x4f8] sm:$0xff] }
  0x78   :  { %1069 = vmatpush.msra.mxu2 %v577_v22  ;;  %1088 = vmatpush.msra.mxu3 %v781_v23  ;;  %v109_v48 = vld [vmem:[#allocation5 + $0x190] sm:$0xff]  ;;  %v410_v17 = vld [vmem:[#allocation5 + $0xaf8] sm:$0xff] }
  0x79   :  { %1030 = vmatpush.msra.mxu0 %v181_v24  ;;  %1050 = vmatpush.msra.mxu1 %v373_v25  ;;  %v301_v49 = vld [vmem:[#allocation5 + $0x790] sm:$0xff]  ;;  %v602_v18 = vld [vmem:[#allocation5 + $0x10f8] sm:$0xff] }
  0x7a   :  { %1070 = vmatpush.msra.mxu2 %v565_v26  ;;  %1089 = vmatpush.msra.mxu3 %v769_v27  ;;  %v493_v50 = vld [vmem:[#allocation5 + $0xd90] sm:$0xff]  ;;  %v806_v19 = vld [vmem:[#allocation5 + $0x1758] sm:$0xff] }
  0x7b   :  { %1031 = vmatpush.msra.mxu0 %v169_v28  ;;  %1051 = vmatpush.msra.mxu1 %v361_v29  ;;  %v697_v51 = vld [vmem:[#allocation5 + $0x13f0] sm:$0xff]  ;;  %v206_v20 = vld [vmem:[#allocation5 + $0x498] sm:$0xff] }
  0x7c   :  { %1071 = vmatpush.msra.mxu2 %v553_v30  ;;  %1090 = vmatpush.msra.mxu3 %v757_v31  ;;  %v97_v52 = vld [vmem:[#allocation5 + $0x130] sm:$0xff]  ;;  %v398_v21 = vld [vmem:[#allocation5 + $0xa98] sm:$0xff] }
  0x7d   :  { %1032 = vmatpush.msra.mxu0 %v157_v32  ;;  %1052 = vmatpush.msra.mxu1 %v349_v33  ;;  %v289_v53 = vld [vmem:[#allocation5 + $0x730] sm:$0xff]  ;;  %v590_v22 = vld [vmem:[#allocation5 + $0x1098] sm:$0xff] }
  0x7e   :  { %1072 = vmatpush.msra.mxu2 %v541_v34  ;;  %1091 = vmatpush.msra.mxu3 %v745_v35  ;;  %v481_v54 = vld [vmem:[#allocation5 + $0xd30] sm:$0xff]  ;;  %v794_v23 = vld [vmem:[#allocation5 + $0x16f8] sm:$0xff] }
  0x7f   :  { %1033 = vmatpush.msra.mxu0 %v145_v36  ;;  %1053 = vmatpush.msra.mxu1 %v337_v37  ;;  %v685_v55 = vld [vmem:[#allocation5 + $0x1390] sm:$0xff]  ;;  %v194_v24 = vld [vmem:[#allocation5 + $0x438] sm:$0xff] }
  0x80   :  { %1073 = vmatpush.msra.mxu2 %v529_v38  ;;  %1092 = vmatpush.msra.mxu3 %v733_v39  ;;  %v85_v56 = vld [vmem:[#allocation5 + $0xd0] sm:$0xff]  ;;  %v386_v25 = vld [vmem:[#allocation5 + $0xa38] sm:$0xff] }
  0x81   :  { %1034 = vmatpush.msra.mxu0 %v133_v40  ;;  %1054 = vmatpush.msra.mxu1 %v325_v41  ;;  %v277_v57 = vld [vmem:[#allocation5 + $0x6d0] sm:$0xff]  ;;  %v578_v26 = vld [vmem:[#allocation5 + $0x1038] sm:$0xff] }
  0x82   :  { %1074 = vmatpush.msra.mxu2 %v517_v42  ;;  %1093 = vmatpush.msra.mxu3 %v721_v43  ;;  %v469_v58 = vld [vmem:[#allocation5 + $0xcd0] sm:$0xff]  ;;  %v782_v27 = vld [vmem:[#allocation5 + $0x1698] sm:$0xff] }
  0x83   :  { %1035 = vmatpush.msra.mxu0 %v121_v44  ;;  %1055 = vmatpush.msra.mxu1 %v313_v45  ;;  %v673_v59 = vld [vmem:[#allocation5 + $0x1330] sm:$0xff]  ;;  %v182_v28 = vld [vmem:[#allocation5 + $0x3d8] sm:$0xff] }
  0x84   :  { %1075 = vmatpush.msra.mxu2 %v505_v46  ;;  %1094 = vmatpush.msra.mxu3 %v709_v47  ;;  %v73_v60 = vld [vmem:[#allocation5 + $0x70] sm:$0xff]  ;;  %v374_v29 = vld [vmem:[#allocation5 + $0x9d8] sm:$0xff] }
  0x85   :  { %1036 = vmatpush.msra.mxu0 %v109_v48  ;;  %1056 = vmatpush.msra.mxu1 %v301_v49  ;;  %v265_v61 = vld [vmem:[#allocation5 + $0x670] sm:$0xff]  ;;  %v566_v30 = vld [vmem:[#allocation5 + $0xfd8] sm:$0xff] }
  0x86   :  { %1076 = vmatpush.msra.mxu2 %v493_v50  ;;  %1095 = vmatpush.msra.mxu3 %v697_v51  ;;  %v457_v62 = vld [vmem:[#allocation5 + $0xc70] sm:$0xff]  ;;  %v770_v31 = vld [vmem:[#allocation5 + $0x1638] sm:$0xff] }
  0x87   :  { %1037 = vmatpush.msra.mxu0 %v97_v52  ;;  %1057 = vmatpush.msra.mxu1 %v289_v53  ;;  %v661_v63 = vld [vmem:[#allocation5 + $0x12d0] sm:$0xff]  ;;  %v170_v32 = vld [vmem:[#allocation5 + $0x378] sm:$0xff] }
  0x88   :  { %1077 = vmatpush.msra.mxu2 %v481_v54  ;;  %1096 = vmatpush.msra.mxu3 %v685_v55  ;;  %v61_v3 = vld [vmem:[#allocation5 + $0x10] sm:$0xff]  ;;  %v362_v33 = vld [vmem:[#allocation5 + $0x978] sm:$0xff] }
  0x89   :  { %1038 = vmatpush.msra.mxu0 %v85_v56  ;;  %1058 = vmatpush.msra.mxu1 %v277_v57  ;;  %v253_v4 = vld [vmem:[#allocation5 + $0x610] sm:$0xff]  ;;  %v554_v34 = vld [vmem:[#allocation5 + $0xf78] sm:$0xff] }
  0x8a   :  { %1078 = vmatpush.msra.mxu2 %v469_v58  ;;  %1097 = vmatpush.msra.mxu3 %v673_v59  ;;  %v445_v5 = vld [vmem:[#allocation5 + $0xc10] sm:$0xff]  ;;  %v758_v35 = vld [vmem:[#allocation5 + $0x15d8] sm:$0xff] }
  0x8b   :  { %1039 = vmatpush.msra.mxu0 %v73_v60  ;;  %1059 = vmatpush.msra.mxu1 %v265_v61  ;;  %v649_v6 = vld [vmem:[#allocation5 + $0x1270] sm:$0xff]  ;;  %v158_v36 = vld [vmem:[#allocation5 + $0x318] sm:$0xff] }
  0x8c   :  { %1079 = vmatpush.msra.mxu2 %v457_v62  ;;  %1098 = vmatpush.msra.mxu3 %v661_v63  ;;  %v637_v11 = vld [vmem:[#allocation5 + $0x1210] sm:$0xff]  ;;  %v350_v37 = vld [vmem:[#allocation5 + $0x918] sm:$0xff] }
  0x8d   :  { %1040 = vmatpush.msra.mxu0 %v61_v3  ;;  %1060 = vmatpush.msra.mxu1 %v253_v4  ;;  %v542_v38 = vld [vmem:[#allocation5 + $0xf18] sm:$0xff] }
  0x8e   :  { %1080 = vmatpush.msra.mxu2 %v445_v5  ;;  %1099 = vmatpush.msra.mxu3 %v649_v6  ;;  %v746_v39 = vld [vmem:[#allocation5 + $0x1578] sm:$0xff] }
  0x8f   :  { %961 = vmatmul.f32.vlgmr.msrb.gmra.mxu0 %v2213_v0  ;;  %981 = vmatmul.f32.vlgmr.msrb.gmra.mxu1 %v2215_v1  ;;  %v146_v40 = vld [vmem:[#allocation5 + $0x2b8] sm:$0xff] }
  0x90   :  { %1001 = vmatmul.f32.vlgmr.msrb.gmra.mxu2 %v2217_v2  ;;  %1105 = vmatpush.msrb.mxu0 %v242_v7  ;;  %v338_v41 = vld [vmem:[#allocation5 + $0x8b8] sm:$0xff] }
  0x91   :  { %1125 = vmatpush.msrb.mxu1 %v434_v9  ;;  %1145 = vmatpush.msrb.mxu2 %v626_v10  ;;  %v530_v42 = vld [vmem:[#allocation5 + $0xeb8] sm:$0xff] }
  0x92   :  { %1100 = vmatpush.msra.mxu3 %v637_v11  ;;  %1106 = vmatpush.msrb.mxu0 %v230_v12  ;;  %v734_v43 = vld [vmem:[#allocation5 + $0x1518] sm:$0xff]  ;;  %v243_v12 = vld [vmem:[#allocation5 + $0x5c0] sm:$0xff] }
  0x93   :  { %1021 = vmatmul.f32.vlgmr.msrb.gmra.mxu3 %v2222_v8  ;;  %1126 = vmatpush.msrb.mxu1 %v422_v13  ;;  %v134_v44 = vld [vmem:[#allocation5 + $0x258] sm:$0xff]  ;;  %v435_v13 = vld [vmem:[#allocation5 + $0xbc0] sm:$0xff] }
  0x94   :  { %1146 = vmatpush.msrb.mxu2 %v614_v14  ;;  %1165 = vmatpush.msrb.mxu3 %v818_v15  ;;  %v326_v45 = vld [vmem:[#allocation5 + $0x858] sm:$0xff]  ;;  %v627_v14 = vld [vmem:[#allocation5 + $0x11c0] sm:$0xff] }
  0x95   :  { %1107 = vmatpush.msrb.mxu0 %v218_v16  ;;  %1127 = vmatpush.msrb.mxu1 %v410_v17  ;;  %v518_v46 = vld [vmem:[#allocation5 + $0xe58] sm:$0xff]  ;;  %v231_v16 = vld [vmem:[#allocation5 + $0x560] sm:$0xff] }
  0x96   :  { %1147 = vmatpush.msrb.mxu2 %v602_v18  ;;  %1166 = vmatpush.msrb.mxu3 %v806_v19  ;;  %v722_v47 = vld [vmem:[#allocation5 + $0x14b8] sm:$0xff]  ;;  %v423_v17 = vld [vmem:[#allocation5 + $0xb60] sm:$0xff] }
  0x97   :  { %1108 = vmatpush.msrb.mxu0 %v206_v20  ;;  %1128 = vmatpush.msrb.mxu1 %v398_v21  ;;  %v122_v48 = vld [vmem:[#allocation5 + $0x1f8] sm:$0xff]  ;;  %v615_v18 = vld [vmem:[#allocation5 + $0x1160] sm:$0xff] }
  0x98   :  { %1148 = vmatpush.msrb.mxu2 %v590_v22  ;;  %1167 = vmatpush.msrb.mxu3 %v794_v23  ;;  %v314_v49 = vld [vmem:[#allocation5 + $0x7f8] sm:$0xff]  ;;  %v819_v19 = vld [vmem:[#allocation5 + $0x17c0] sm:$0xff] }
  0x99   :  { %1109 = vmatpush.msrb.mxu0 %v194_v24  ;;  %1129 = vmatpush.msrb.mxu1 %v386_v25  ;;  %v506_v50 = vld [vmem:[#allocation5 + $0xdf8] sm:$0xff]  ;;  %v219_v20 = vld [vmem:[#allocation5 + $0x500] sm:$0xff] }
  0x9a   :  { %1149 = vmatpush.msrb.mxu2 %v578_v26  ;;  %1168 = vmatpush.msrb.mxu3 %v782_v27  ;;  %v710_v51 = vld [vmem:[#allocation5 + $0x1458] sm:$0xff]  ;;  %v411_v21 = vld [vmem:[#allocation5 + $0xb00] sm:$0xff] }
  0x9b   :  { %1110 = vmatpush.msrb.mxu0 %v182_v28  ;;  %1130 = vmatpush.msrb.mxu1 %v374_v29  ;;  %v110_v52 = vld [vmem:[#allocation5 + $0x198] sm:$0xff]  ;;  %v603_v22 = vld [vmem:[#allocation5 + $0x1100] sm:$0xff] }
  0x9c   :  { %1150 = vmatpush.msrb.mxu2 %v566_v30  ;;  %1169 = vmatpush.msrb.mxu3 %v770_v31  ;;  %v302_v53 = vld [vmem:[#allocation5 + $0x798] sm:$0xff]  ;;  %v807_v23 = vld [vmem:[#allocation5 + $0x1760] sm:$0xff] }
  0x9d   :  { %1111 = vmatpush.msrb.mxu0 %v170_v32  ;;  %1131 = vmatpush.msrb.mxu1 %v362_v33  ;;  %v494_v54 = vld [vmem:[#allocation5 + $0xd98] sm:$0xff]  ;;  %v207_v24 = vld [vmem:[#allocation5 + $0x4a0] sm:$0xff] }
  0x9e   :  { %1151 = vmatpush.msrb.mxu2 %v554_v34  ;;  %1170 = vmatpush.msrb.mxu3 %v758_v35  ;;  %v698_v55 = vld [vmem:[#allocation5 + $0x13f8] sm:$0xff]  ;;  %v399_v25 = vld [vmem:[#allocation5 + $0xaa0] sm:$0xff] }
  0x9f   :  { %1112 = vmatpush.msrb.mxu0 %v158_v36  ;;  %1132 = vmatpush.msrb.mxu1 %v350_v37  ;;  %v98_v56 = vld [vmem:[#allocation5 + $0x138] sm:$0xff]  ;;  %v591_v26 = vld [vmem:[#allocation5 + $0x10a0] sm:$0xff] }
  0xa0   :  { %1152 = vmatpush.msrb.mxu2 %v542_v38  ;;  %1171 = vmatpush.msrb.mxu3 %v746_v39  ;;  %v290_v57 = vld [vmem:[#allocation5 + $0x738] sm:$0xff]  ;;  %v795_v27 = vld [vmem:[#allocation5 + $0x1700] sm:$0xff] }
  0xa1   :  { %1113 = vmatpush.msrb.mxu0 %v146_v40  ;;  %1133 = vmatpush.msrb.mxu1 %v338_v41  ;;  %v482_v58 = vld [vmem:[#allocation5 + $0xd38] sm:$0xff]  ;;  %v195_v28 = vld [vmem:[#allocation5 + $0x440] sm:$0xff] }
  0xa2   :  { %1153 = vmatpush.msrb.mxu2 %v530_v42  ;;  %1172 = vmatpush.msrb.mxu3 %v734_v43  ;;  %v686_v59 = vld [vmem:[#allocation5 + $0x1398] sm:$0xff]  ;;  %v387_v29 = vld [vmem:[#allocation5 + $0xa40] sm:$0xff] }
  0xa3   :  { %1114 = vmatpush.msrb.mxu0 %v134_v44  ;;  %1134 = vmatpush.msrb.mxu1 %v326_v45  ;;  %v86_v60 = vld [vmem:[#allocation5 + $0xd8] sm:$0xff]  ;;  %v579_v30 = vld [vmem:[#allocation5 + $0x1040] sm:$0xff] }
  0xa4   :  { %1154 = vmatpush.msrb.mxu2 %v518_v46  ;;  %1173 = vmatpush.msrb.mxu3 %v722_v47  ;;  %v278_v61 = vld [vmem:[#allocation5 + $0x6d8] sm:$0xff]  ;;  %v783_v31 = vld [vmem:[#allocation5 + $0x16a0] sm:$0xff] }
  0xa5   :  { %1115 = vmatpush.msrb.mxu0 %v122_v48  ;;  %1135 = vmatpush.msrb.mxu1 %v314_v49  ;;  %v470_v62 = vld [vmem:[#allocation5 + $0xcd8] sm:$0xff]  ;;  %v183_v32 = vld [vmem:[#allocation5 + $0x3e0] sm:$0xff] }
  0xa6   :  { %1155 = vmatpush.msrb.mxu2 %v506_v50  ;;  %1174 = vmatpush.msrb.mxu3 %v710_v51  ;;  %v674_v63 = vld [vmem:[#allocation5 + $0x1338] sm:$0xff]  ;;  %v375_v33 = vld [vmem:[#allocation5 + $0x9e0] sm:$0xff] }
  0xa7   :  { %1116 = vmatpush.msrb.mxu0 %v110_v52  ;;  %1136 = vmatpush.msrb.mxu1 %v302_v53  ;;  %v74_v3 = vld [vmem:[#allocation5 + $0x78] sm:$0xff]  ;;  %v567_v34 = vld [vmem:[#allocation5 + $0xfe0] sm:$0xff] }
  0xa8   :  { %1156 = vmatpush.msrb.mxu2 %v494_v54  ;;  %1175 = vmatpush.msrb.mxu3 %v698_v55  ;;  %v266_v4 = vld [vmem:[#allocation5 + $0x678] sm:$0xff]  ;;  %v771_v35 = vld [vmem:[#allocation5 + $0x1640] sm:$0xff] }
  0xa9   :  { %1117 = vmatpush.msrb.mxu0 %v98_v56  ;;  %1137 = vmatpush.msrb.mxu1 %v290_v57  ;;  %v458_v5 = vld [vmem:[#allocation5 + $0xc78] sm:$0xff]  ;;  %v171_v36 = vld [vmem:[#allocation5 + $0x380] sm:$0xff] }
  0xaa   :  { %1157 = vmatpush.msrb.mxu2 %v482_v58  ;;  %1176 = vmatpush.msrb.mxu3 %v686_v59  ;;  %v662_v6 = vld [vmem:[#allocation5 + $0x12d8] sm:$0xff]  ;;  %v363_v37 = vld [vmem:[#allocation5 + $0x980] sm:$0xff] }
  0xab   :  { %1118 = vmatpush.msrb.mxu0 %v86_v60  ;;  %1138 = vmatpush.msrb.mxu1 %v278_v61  ;;  %v62_v7 = vld [vmem:[#allocation5 + $0x18] sm:$0xff]  ;;  %v555_v38 = vld [vmem:[#allocation5 + $0xf80] sm:$0xff] }
  0xac   :  { %1158 = vmatpush.msrb.mxu2 %v470_v62  ;;  %1177 = vmatpush.msrb.mxu3 %v674_v63  ;;  %v254_v9 = vld [vmem:[#allocation5 + $0x618] sm:$0xff]  ;;  %v759_v39 = vld [vmem:[#allocation5 + $0x15e0] sm:$0xff] }
  0xad   :  { %1119 = vmatpush.msrb.mxu0 %v74_v3  ;;  %1139 = vmatpush.msrb.mxu1 %v266_v4  ;;  %v446_v10 = vld [vmem:[#allocation5 + $0xc18] sm:$0xff]  ;;  %v159_v40 = vld [vmem:[#allocation5 + $0x320] sm:$0xff] }
  0xae   :  { %v650_v11 = vld [vmem:[#allocation5 + $0x1278] sm:$0xff]  ;;  %1159 = vmatpush.msrb.mxu2 %v458_v5  ;;  %1178 = vmatpush.msrb.mxu3 %v662_v6  ;;  %v351_v41 = vld [vmem:[#allocation5 + $0x920] sm:$0xff] }
  0xaf   :  { %1120 = vmatpush.msrb.mxu0 %v62_v7  ;;  %1140 = vmatpush.msrb.mxu1 %v254_v9  ;;  %v638_v15 = vld [vmem:[#allocation5 + $0x1218] sm:$0xff]  ;;  %v543_v42 = vld [vmem:[#allocation5 + $0xf20] sm:$0xff] }
  0xb0   :  { %1160 = vmatpush.msrb.mxu2 %v446_v10  ;;  %1179 = vmatpush.msrb.mxu3 %v650_v11  ;;  %v747_v43 = vld [vmem:[#allocation5 + $0x1580] sm:$0xff] }
  0xb1   :  { %1041 = vmatmul.f32.vlgmr.msra.gmra.mxu0 %v2213_v0  ;;  %1061 = vmatmul.f32.vlgmr.msra.gmra.mxu1 %v2215_v1  ;;  %v147_v44 = vld [vmem:[#allocation5 + $0x2c0] sm:$0xff] }
  0xb2   :  { %1081 = vmatmul.f32.vlgmr.msra.gmra.mxu2 %v2217_v2  ;;  %1185 = vmatpush.msra.mxu0 %v243_v12  ;;  %v339_v45 = vld [vmem:[#allocation5 + $0x8c0] sm:$0xff] }
  0xb3   :  { %1205 = vmatpush.msra.mxu1 %v435_v13  ;;  %1225 = vmatpush.msra.mxu2 %v627_v14  ;;  %v531_v46 = vld [vmem:[#allocation5 + $0xec0] sm:$0xff] }
  0xb4   :  { %1180 = vmatpush.msrb.mxu3 %v638_v15  ;;  %1186 = vmatpush.msra.mxu0 %v231_v16  ;;  %v735_v47 = vld [vmem:[#allocation5 + $0x1520] sm:$0xff]  ;;  %v244_v16 = vld [vmem:[#allocation5 + $0x5c8] sm:$0xff] }
  0xb5   :  { %1101 = vmatmul.f32.vlgmr.msra.gmra.mxu3 %v2222_v8  ;;  %1206 = vmatpush.msra.mxu1 %v423_v17  ;;  %v135_v48 = vld [vmem:[#allocation5 + $0x260] sm:$0xff]  ;;  %v436_v17 = vld [vmem:[#allocation5 + $0xbc8] sm:$0xff] }
  0xb6   :  { %1226 = vmatpush.msra.mxu2 %v615_v18  ;;  %1245 = vmatpush.msra.mxu3 %v819_v19  ;;  %v327_v49 = vld [vmem:[#allocation5 + $0x860] sm:$0xff]  ;;  %v628_v18 = vld [vmem:[#allocation5 + $0x11c8] sm:$0xff] }
  0xb7   :  { %1187 = vmatpush.msra.mxu0 %v219_v20  ;;  %1207 = vmatpush.msra.mxu1 %v411_v21  ;;  %v519_v50 = vld [vmem:[#allocation5 + $0xe60] sm:$0xff]  ;;  %v232_v20 = vld [vmem:[#allocation5 + $0x568] sm:$0xff] }
  0xb8   :  { %1227 = vmatpush.msra.mxu2 %v603_v22  ;;  %1246 = vmatpush.msra.mxu3 %v807_v23  ;;  %v723_v51 = vld [vmem:[#allocation5 + $0x14c0] sm:$0xff]  ;;  %v424_v21 = vld [vmem:[#allocation5 + $0xb68] sm:$0xff] }
  0xb9   :  { %1188 = vmatpush.msra.mxu0 %v207_v24  ;;  %1208 = vmatpush.msra.mxu1 %v399_v25  ;;  %v123_v52 = vld [vmem:[#allocation5 + $0x200] sm:$0xff]  ;;  %v616_v22 = vld [vmem:[#allocation5 + $0x1168] sm:$0xff] }
  0xba   :  { %1228 = vmatpush.msra.mxu2 %v591_v26  ;;  %1247 = vmatpush.msra.mxu3 %v795_v27  ;;  %v315_v53 = vld [vmem:[#allocation5 + $0x800] sm:$0xff]  ;;  %v820_v23 = vld [vmem:[#allocation5 + $0x17c8] sm:$0xff] }
  0xbb   :  { %1189 = vmatpush.msra.mxu0 %v195_v28  ;;  %1209 = vmatpush.msra.mxu1 %v387_v29  ;;  %v507_v54 = vld [vmem:[#allocation5 + $0xe00] sm:$0xff]  ;;  %v220_v24 = vld [vmem:[#allocation5 + $0x508] sm:$0xff] }
  0xbc   :  { %1229 = vmatpush.msra.mxu2 %v579_v30  ;;  %1248 = vmatpush.msra.mxu3 %v783_v31  ;;  %v711_v55 = vld [vmem:[#allocation5 + $0x1460] sm:$0xff]  ;;  %v412_v25 = vld [vmem:[#allocation5 + $0xb08] sm:$0xff] }
  0xbd   :  { %1190 = vmatpush.msra.mxu0 %v183_v32  ;;  %1210 = vmatpush.msra.mxu1 %v375_v33  ;;  %v111_v56 = vld [vmem:[#allocation5 + $0x1a0] sm:$0xff]  ;;  %v808_v26 = vld [vmem:[#allocation5 + $0x1768] sm:$0xff] }
  0xbe   :  { %1230 = vmatpush.msra.mxu2 %v567_v34  ;;  %1249 = vmatpush.msra.mxu3 %v771_v35  ;;  %v303_v57 = vld [vmem:[#allocation5 + $0x7a0] sm:$0xff]  ;;  %v400_v27 = vld [vmem:[#allocation5 + $0xaa8] sm:$0xff] }
  0xbf   :  { %1191 = vmatpush.msra.mxu0 %v171_v36  ;;  %1211 = vmatpush.msra.mxu1 %v363_v37  ;;  %v495_v58 = vld [vmem:[#allocation5 + $0xda0] sm:$0xff]  ;;  %v796_v28 = vld [vmem:[#allocation5 + $0x1708] sm:$0xff] }
  0xc0   :  { %1231 = vmatpush.msra.mxu2 %v555_v38  ;;  %1250 = vmatpush.msra.mxu3 %v759_v39  ;;  %v699_v59 = vld [vmem:[#allocation5 + $0x1400] sm:$0xff]  ;;  %v196_v29 = vld [vmem:[#allocation5 + $0x448] sm:$0xff] }
  0xc1   :  { %1192 = vmatpush.msra.mxu0 %v159_v40  ;;  %1212 = vmatpush.msra.mxu1 %v351_v41  ;;  %v99_v60 = vld [vmem:[#allocation5 + $0x140] sm:$0xff]  ;;  %v388_v30 = vld [vmem:[#allocation5 + $0xa48] sm:$0xff] }
  0xc2   :  { %1232 = vmatpush.msra.mxu2 %v543_v42  ;;  %1251 = vmatpush.msra.mxu3 %v747_v43  ;;  %v291_v61 = vld [vmem:[#allocation5 + $0x740] sm:$0xff]  ;;  %v580_v31 = vld [vmem:[#allocation5 + $0x1048] sm:$0xff] }
  0xc3   :  { %1193 = vmatpush.msra.mxu0 %v147_v44  ;;  %1213 = vmatpush.msra.mxu1 %v339_v45  ;;  %v483_v62 = vld [vmem:[#allocation5 + $0xd40] sm:$0xff]  ;;  %v784_v32 = vld [vmem:[#allocation5 + $0x16a8] sm:$0xff] }
  0xc4   :  { %1233 = vmatpush.msra.mxu2 %v531_v46  ;;  %1252 = vmatpush.msra.mxu3 %v735_v47  ;;  %v687_v63 = vld [vmem:[#allocation5 + $0x13a0] sm:$0xff]  ;;  %v376_v33 = vld [vmem:[#allocation5 + $0x9e8] sm:$0xff] }
  0xc5   :  { %1194 = vmatpush.msra.mxu0 %v135_v48  ;;  %1214 = vmatpush.msra.mxu1 %v327_v49  ;;  %v87_v3 = vld [vmem:[#allocation5 + $0xe0] sm:$0xff]  ;;  %v568_v34 = vld [vmem:[#allocation5 + $0xfe8] sm:$0xff] }
  0xc6   :  { %1234 = vmatpush.msra.mxu2 %v519_v50  ;;  %1253 = vmatpush.msra.mxu3 %v723_v51  ;;  %v279_v4 = vld [vmem:[#allocation5 + $0x6e0] sm:$0xff]  ;;  %v772_v35 = vld [vmem:[#allocation5 + $0x1648] sm:$0xff] }
  0xc7   :  { %1195 = vmatpush.msra.mxu0 %v123_v52  ;;  %1215 = vmatpush.msra.mxu1 %v315_v53  ;;  %v471_v5 = vld [vmem:[#allocation5 + $0xce0] sm:$0xff]  ;;  %v172_v36 = vld [vmem:[#allocation5 + $0x388] sm:$0xff] }
  0xc8   :  { %1235 = vmatpush.msra.mxu2 %v507_v54  ;;  %1254 = vmatpush.msra.mxu3 %v711_v55  ;;  %v675_v6 = vld [vmem:[#allocation5 + $0x1340] sm:$0xff]  ;;  %v364_v37 = vld [vmem:[#allocation5 + $0x988] sm:$0xff] }
  0xc9   :  { %1196 = vmatpush.msra.mxu0 %v111_v56  ;;  %1216 = vmatpush.msra.mxu1 %v303_v57  ;;  %v75_v7 = vld [vmem:[#allocation5 + $0x80] sm:$0xff]  ;;  %v556_v38 = vld [vmem:[#allocation5 + $0xf88] sm:$0xff] }
  0xca   :  { %1236 = vmatpush.msra.mxu2 %v495_v58  ;;  %1255 = vmatpush.msra.mxu3 %v699_v59  ;;  %v267_v9 = vld [vmem:[#allocation5 + $0x680] sm:$0xff]  ;;  %v760_v39 = vld [vmem:[#allocation5 + $0x15e8] sm:$0xff] }
  0xcb   :  { %1197 = vmatpush.msra.mxu0 %v99_v60  ;;  %1217 = vmatpush.msra.mxu1 %v291_v61  ;;  %v459_v10 = vld [vmem:[#allocation5 + $0xc80] sm:$0xff]  ;;  %v160_v40 = vld [vmem:[#allocation5 + $0x328] sm:$0xff] }
  0xcc   :  { %1237 = vmatpush.msra.mxu2 %v483_v62  ;;  %1256 = vmatpush.msra.mxu3 %v687_v63  ;;  %v663_v11 = vld [vmem:[#allocation5 + $0x12e0] sm:$0xff]  ;;  %v352_v41 = vld [vmem:[#allocation5 + $0x928] sm:$0xff] }
  0xcd   :  { %1198 = vmatpush.msra.mxu0 %v87_v3  ;;  %1218 = vmatpush.msra.mxu1 %v279_v4  ;;  %v63_v12 = vld [vmem:[#allocation5 + $0x20] sm:$0xff]  ;;  %v544_v42 = vld [vmem:[#allocation5 + $0xf28] sm:$0xff] }
  0xce   :  { %1238 = vmatpush.msra.mxu2 %v471_v5  ;;  %1257 = vmatpush.msra.mxu3 %v675_v6  ;;  %v255_v13 = vld [vmem:[#allocation5 + $0x620] sm:$0xff]  ;;  %v748_v43 = vld [vmem:[#allocation5 + $0x1588] sm:$0xff] }
  0xcf   :  { %1199 = vmatpush.msra.mxu0 %v75_v7  ;;  %1219 = vmatpush.msra.mxu1 %v267_v9  ;;  %v447_v14 = vld [vmem:[#allocation5 + $0xc20] sm:$0xff]  ;;  %v148_v44 = vld [vmem:[#allocation5 + $0x2c8] sm:$0xff] }
  0xd0   :  { %v651_v15 = vld [vmem:[#allocation5 + $0x1280] sm:$0xff]  ;;  %1239 = vmatpush.msra.mxu2 %v459_v10  ;;  %1258 = vmatpush.msra.mxu3 %v663_v11  ;;  %v340_v45 = vld [vmem:[#allocation5 + $0x8c8] sm:$0xff] }
  0xd1   :  { %1200 = vmatpush.msra.mxu0 %v63_v12  ;;  %1220 = vmatpush.msra.mxu1 %v255_v13  ;;  %v639_v19 = vld [vmem:[#allocation5 + $0x1220] sm:$0xff]  ;;  %v532_v46 = vld [vmem:[#allocation5 + $0xec8] sm:$0xff] }
  0xd2   :  { %1240 = vmatpush.msra.mxu2 %v447_v14  ;;  %1259 = vmatpush.msra.mxu3 %v651_v15  ;;  %v736_v47 = vld [vmem:[#allocation5 + $0x1528] sm:$0xff] }
  0xd3   :  { %1121 = vmatmul.f32.vlgmr.msrb.gmra.mxu0 %v2213_v0  ;;  %1141 = vmatmul.f32.vlgmr.msrb.gmra.mxu1 %v2215_v1  ;;  %v604_v0 = vld [vmem:[#allocation5 + $0x1108] sm:$0xff] }
  0xd4   :  { %1161 = vmatmul.f32.vlgmr.msrb.gmra.mxu2 %v2217_v2  ;;  %1265 = vmatpush.msrb.mxu0 %v244_v16  ;;  %v208_v1 = vld [vmem:[#allocation5 + $0x4a8] sm:$0xff]  ;;  %v245_v16 = vld [vmem:[#allocation5 + $0x5d0] sm:$0xff] }
  0xd5   :  { %1285 = vmatpush.msrb.mxu1 %v436_v17  ;;  %1305 = vmatpush.msrb.mxu2 %v628_v18  ;;  %v592_v2 = vld [vmem:[#allocation5 + $0x10a8] sm:$0xff]  ;;  %v437_v17 = vld [vmem:[#allocation5 + $0xbd0] sm:$0xff] }
  0xd6   :  { %1260 = vmatpush.msra.mxu3 %v639_v19  ;;  %1266 = vmatpush.msrb.mxu0 %v232_v20  ;;  %v136_v48 = vld [vmem:[#allocation5 + $0x268] sm:$0xff]  ;;  %v629_v18 = vld [vmem:[#allocation5 + $0x11d0] sm:$0xff]  ;;  %v2240_v20 = vld.sshfl [vmem:[#allocation1 + $0x8] sm:$0xff pattern:$0x73625140] }
  0xd7   :  { %1181 = vmatmul.f32.vlgmr.msrb.gmra.mxu3 %v2222_v8  ;;  %1286 = vmatpush.msrb.mxu1 %v424_v21  ;;  %v184_v8 = vld [vmem:[#allocation5 + $0x3e8] sm:$0xff]  ;;  %v2237_v19 = vld.sshfl [vmem:[#allocation1] sm:$0xff pattern:$0x73625140] }
  0xd8   :  { %1306 = vmatpush.msrb.mxu2 %v616_v22  ;;  %1325 = vmatpush.msrb.mxu3 %v820_v23  ;;  %v328_v49 = vld [vmem:[#allocation5 + $0x868] sm:$0xff]  ;;  %v233_v22 = vld [vmem:[#allocation5 + $0x570] sm:$0xff]  ;;  %v2243_v23 = vld.sshfl [vmem:[#allocation1 + $0x10] sm:$0xff pattern:$0x73625140] }
  0xd9   :  { %1267 = vmatpush.msrb.mxu0 %v220_v24  ;;  %1287 = vmatpush.msrb.mxu1 %v412_v25  ;;  %v520_v50 = vld [vmem:[#allocation5 + $0xe68] sm:$0xff]  ;;  %v425_v24 = vld [vmem:[#allocation5 + $0xb70] sm:$0xff] }
  0xda   :  { %1307 = vmatpush.msrb.mxu2 %v604_v0  ;;  %1326 = vmatpush.msrb.mxu3 %v808_v26  ;;  %v724_v51 = vld [vmem:[#allocation5 + $0x14c8] sm:$0xff]  ;;  %v617_v25 = vld [vmem:[#allocation5 + $0x1170] sm:$0xff] }
  0xdb   :  { %1268 = vmatpush.msrb.mxu0 %v208_v1  ;;  %1288 = vmatpush.msrb.mxu1 %v400_v27  ;;  %v124_v52 = vld [vmem:[#allocation5 + $0x208] sm:$0xff]  ;;  %v821_v0 = vld [vmem:[#allocation5 + $0x17d0] sm:$0xff] }
  0xdc   :  { %1308 = vmatpush.msrb.mxu2 %v592_v2  ;;  %1327 = vmatpush.msrb.mxu3 %v796_v28  ;;  %v316_v53 = vld [vmem:[#allocation5 + $0x808] sm:$0xff]  ;;  %v221_v26 = vld [vmem:[#allocation5 + $0x510] sm:$0xff] }
  0xdd   :  { %1269 = vmatpush.msrb.mxu0 %v196_v29  ;;  %1289 = vmatpush.msrb.mxu1 %v388_v30  ;;  %v508_v54 = vld [vmem:[#allocation5 + $0xe08] sm:$0xff]  ;;  %v413_v1 = vld [vmem:[#allocation5 + $0xb10] sm:$0xff] }
  0xde   :  { %1309 = vmatpush.msrb.mxu2 %v580_v31  ;;  %1328 = vmatpush.msrb.mxu3 %v784_v32  ;;  %v712_v55 = vld [vmem:[#allocation5 + $0x1468] sm:$0xff]  ;;  %v605_v2 = vld [vmem:[#allocation5 + $0x1110] sm:$0xff] }
  0xdf   :  { %1270 = vmatpush.msrb.mxu0 %v184_v8  ;;  %1290 = vmatpush.msrb.mxu1 %v376_v33  ;;  %v112_v56 = vld [vmem:[#allocation5 + $0x1a8] sm:$0xff]  ;;  %v809_v28 = vld [vmem:[#allocation5 + $0x1770] sm:$0xff] }
  0xe0   :  { %1310 = vmatpush.msrb.mxu2 %v568_v34  ;;  %1329 = vmatpush.msrb.mxu3 %v772_v35  ;;  %v304_v57 = vld [vmem:[#allocation5 + $0x7a8] sm:$0xff]  ;;  %v209_v29 = vld [vmem:[#allocation5 + $0x4b0] sm:$0xff] }
  0xe1   :  { %1271 = vmatpush.msrb.mxu0 %v172_v36  ;;  %1291 = vmatpush.msrb.mxu1 %v364_v37  ;;  %v496_v58 = vld [vmem:[#allocation5 + $0xda8] sm:$0xff]  ;;  %v401_v30 = vld [vmem:[#allocation5 + $0xab0] sm:$0xff] }
  0xe2   :  { %1311 = vmatpush.msrb.mxu2 %v556_v38  ;;  %1330 = vmatpush.msrb.mxu3 %v760_v39  ;;  %v700_v59 = vld [vmem:[#allocation5 + $0x1408] sm:$0xff]  ;;  %v593_v31 = vld [vmem:[#allocation5 + $0x10b0] sm:$0xff] }
  0xe3   :  { %1272 = vmatpush.msrb.mxu0 %v160_v40  ;;  %1292 = vmatpush.msrb.mxu1 %v352_v41  ;;  %v100_v60 = vld [vmem:[#allocation5 + $0x148] sm:$0xff]  ;;  %v797_v32 = vld [vmem:[#allocation5 + $0x1710] sm:$0xff] }
  0xe4   :  { %1312 = vmatpush.msrb.mxu2 %v544_v42  ;;  %1331 = vmatpush.msrb.mxu3 %v748_v43  ;;  %v292_v61 = vld [vmem:[#allocation5 + $0x748] sm:$0xff]  ;;  %v197_v8 = vld [vmem:[#allocation5 + $0x450] sm:$0xff] }
  0xe5   :  { %1273 = vmatpush.msrb.mxu0 %v148_v44  ;;  %1293 = vmatpush.msrb.mxu1 %v340_v45  ;;  %v484_v62 = vld [vmem:[#allocation5 + $0xd48] sm:$0xff]  ;;  %v389_v33 = vld [vmem:[#allocation5 + $0xa50] sm:$0xff] }
  0xe6   :  { %1313 = vmatpush.msrb.mxu2 %v532_v46  ;;  %1332 = vmatpush.msrb.mxu3 %v736_v47  ;;  %v688_v63 = vld [vmem:[#allocation5 + $0x13a8] sm:$0xff]  ;;  %v581_v34 = vld [vmem:[#allocation5 + $0x1050] sm:$0xff] }
  0xe7   :  { %1274 = vmatpush.msrb.mxu0 %v136_v48  ;;  %1294 = vmatpush.msrb.mxu1 %v328_v49  ;;  %v88_v3 = vld [vmem:[#allocation5 + $0xe8] sm:$0xff]  ;;  %v785_v35 = vld [vmem:[#allocation5 + $0x16b0] sm:$0xff] }
  0xe8   :  { %1314 = vmatpush.msrb.mxu2 %v520_v50  ;;  %1333 = vmatpush.msrb.mxu3 %v724_v51  ;;  %v280_v4 = vld [vmem:[#allocation5 + $0x6e8] sm:$0xff]  ;;  %v185_v36 = vld [vmem:[#allocation5 + $0x3f0] sm:$0xff] }
  0xe9   :  { %1275 = vmatpush.msrb.mxu0 %v124_v52  ;;  %1295 = vmatpush.msrb.mxu1 %v316_v53  ;;  %v472_v5 = vld [vmem:[#allocation5 + $0xce8] sm:$0xff]  ;;  %v377_v37 = vld [vmem:[#allocation5 + $0x9f0] sm:$0xff] }
  0xea   :  { %1315 = vmatpush.msrb.mxu2 %v508_v54  ;;  %1334 = vmatpush.msrb.mxu3 %v712_v55  ;;  %v676_v6 = vld [vmem:[#allocation5 + $0x1348] sm:$0xff]  ;;  %v569_v38 = vld [vmem:[#allocation5 + $0xff0] sm:$0xff] }
  0xeb   :  { %1276 = vmatpush.msrb.mxu0 %v112_v56  ;;  %1296 = vmatpush.msrb.mxu1 %v304_v57  ;;  %v76_v7 = vld [vmem:[#allocation5 + $0x88] sm:$0xff]  ;;  %v773_v39 = vld [vmem:[#allocation5 + $0x1650] sm:$0xff] }
  0xec   :  { %1316 = vmatpush.msrb.mxu2 %v496_v58  ;;  %1335 = vmatpush.msrb.mxu3 %v700_v59  ;;  %v268_v9 = vld [vmem:[#allocation5 + $0x688] sm:$0xff]  ;;  %v173_v40 = vld [vmem:[#allocation5 + $0x390] sm:$0xff] }
  0xed   :  { %1277 = vmatpush.msrb.mxu0 %v100_v60  ;;  %1297 = vmatpush.msrb.mxu1 %v292_v61  ;;  %v460_v10 = vld [vmem:[#allocation5 + $0xc88] sm:$0xff]  ;;  %v365_v41 = vld [vmem:[#allocation5 + $0x990] sm:$0xff] }
  0xee   :  { %1317 = vmatpush.msrb.mxu2 %v484_v62  ;;  %1336 = vmatpush.msrb.mxu3 %v688_v63  ;;  %v664_v11 = vld [vmem:[#allocation5 + $0x12e8] sm:$0xff]  ;;  %v557_v42 = vld [vmem:[#allocation5 + $0xf90] sm:$0xff] }
  0xef   :  { %1278 = vmatpush.msrb.mxu0 %v88_v3  ;;  %1298 = vmatpush.msrb.mxu1 %v280_v4  ;;  %v64_v12 = vld [vmem:[#allocation5 + $0x28] sm:$0xff]  ;;  %v761_v43 = vld [vmem:[#allocation5 + $0x15f0] sm:$0xff] }
  0xf0   :  { %1318 = vmatpush.msrb.mxu2 %v472_v5  ;;  %1337 = vmatpush.msrb.mxu3 %v676_v6  ;;  %v256_v13 = vld [vmem:[#allocation5 + $0x628] sm:$0xff]  ;;  %v161_v44 = vld [vmem:[#allocation5 + $0x330] sm:$0xff] }
  0xf1   :  { %1279 = vmatpush.msrb.mxu0 %v76_v7  ;;  %1299 = vmatpush.msrb.mxu1 %v268_v9  ;;  %v448_v14 = vld [vmem:[#allocation5 + $0xc28] sm:$0xff]  ;;  %v353_v45 = vld [vmem:[#allocation5 + $0x930] sm:$0xff] }
  0xf2   :  { %v652_v15 = vld [vmem:[#allocation5 + $0x1288] sm:$0xff]  ;;  %1319 = vmatpush.msrb.mxu2 %v460_v10  ;;  %1338 = vmatpush.msrb.mxu3 %v664_v11  ;;  %v545_v46 = vld [vmem:[#allocation5 + $0xf30] sm:$0xff] }
  0xf3   :  { %1280 = vmatpush.msrb.mxu0 %v64_v12  ;;  %1300 = vmatpush.msrb.mxu1 %v256_v13  ;;  %v640_v21 = vld [vmem:[#allocation5 + $0x1228] sm:$0xff]  ;;  %v749_v47 = vld [vmem:[#allocation5 + $0x1590] sm:$0xff] }
  0xf4   :  { %1320 = vmatpush.msrb.mxu2 %v448_v14  ;;  %1339 = vmatpush.msrb.mxu3 %v652_v15  ;;  %v2246_v27 = vld.sshfl [vmem:[#allocation1 + $0x18] sm:$0xff pattern:$0x73625140]  ;;  %v149_v48 = vld [vmem:[#allocation5 + $0x2d0] sm:$0xff] }
  0xf5   :  { %1201 = vmatmul.f32.vlgmr.msra.gmra.mxu0 %v2237_v19  ;;  %1221 = vmatmul.f32.vlgmr.msra.gmra.mxu1 %v2240_v20  ;;  %v341_v49 = vld [vmem:[#allocation5 + $0x8d0] sm:$0xff] }
  0xf6   :  { %1241 = vmatmul.f32.vlgmr.msra.gmra.mxu2 %v2243_v23  ;;  %1345 = vmatpush.msra.mxu0 %v245_v16  ;;  %v533_v50 = vld [vmem:[#allocation5 + $0xed0] sm:$0xff] }
  0xf7   :  { %1365 = vmatpush.msra.mxu1 %v437_v17  ;;  %1385 = vmatpush.msra.mxu2 %v629_v18  ;;  %v737_v51 = vld [vmem:[#allocation5 + $0x1530] sm:$0xff] }
  0xf8   :  { %1340 = vmatpush.msrb.mxu3 %v640_v21  ;;  %1346 = vmatpush.msra.mxu0 %v233_v22  ;;  %v137_v52 = vld [vmem:[#allocation5 + $0x270] sm:$0xff]  ;;  %v246_v22 = vld [vmem:[#allocation5 + $0x5d8] sm:$0xff] }
  0xf9   :  { %1261 = vmatmul.f32.vlgmr.msra.gmra.mxu3 %v2246_v27  ;;  %1366 = vmatpush.msra.mxu1 %v425_v24  ;;  %v329_v53 = vld [vmem:[#allocation5 + $0x870] sm:$0xff]  ;;  %v438_v24 = vld [vmem:[#allocation5 + $0xbd8] sm:$0xff] }
  0xfa   :  { %1386 = vmatpush.msra.mxu2 %v617_v25  ;;  %1405 = vmatpush.msra.mxu3 %v821_v0  ;;  %v521_v54 = vld [vmem:[#allocation5 + $0xe70] sm:$0xff]  ;;  %v630_v25 = vld [vmem:[#allocation5 + $0x11d8] sm:$0xff] }
  0xfb   :  { %1347 = vmatpush.msra.mxu0 %v221_v26  ;;  %1367 = vmatpush.msra.mxu1 %v413_v1  ;;  %v725_v55 = vld [vmem:[#allocation5 + $0x14d0] sm:$0xff]  ;;  %v234_v26 = vld [vmem:[#allocation5 + $0x578] sm:$0xff] }
  0xfc   :  { %1387 = vmatpush.msra.mxu2 %v605_v2  ;;  %1406 = vmatpush.msra.mxu3 %v809_v28  ;;  %v125_v56 = vld [vmem:[#allocation5 + $0x210] sm:$0xff]  ;;  %v426_v1 = vld [vmem:[#allocation5 + $0xb78] sm:$0xff] }
  0xfd   :  { %1348 = vmatpush.msra.mxu0 %v209_v29  ;;  %1368 = vmatpush.msra.mxu1 %v401_v30  ;;  %v317_v57 = vld [vmem:[#allocation5 + $0x810] sm:$0xff]  ;;  %v618_v2 = vld [vmem:[#allocation5 + $0x1178] sm:$0xff] }
  0xfe   :  { %1388 = vmatpush.msra.mxu2 %v593_v31  ;;  %1407 = vmatpush.msra.mxu3 %v797_v32  ;;  %v509_v58 = vld [vmem:[#allocation5 + $0xe10] sm:$0xff]  ;;  %v822_v28 = vld [vmem:[#allocation5 + $0x17d8] sm:$0xff] }
  0xff   :  { %1349 = vmatpush.msra.mxu0 %v197_v8  ;;  %1369 = vmatpush.msra.mxu1 %v389_v33  ;;  %v713_v59 = vld [vmem:[#allocation5 + $0x1470] sm:$0xff]  ;;  %v222_v29 = vld [vmem:[#allocation5 + $0x518] sm:$0xff] }
 0x100   :  { %1389 = vmatpush.msra.mxu2 %v581_v34  ;;  %1408 = vmatpush.msra.mxu3 %v785_v35  ;;  %v113_v60 = vld [vmem:[#allocation5 + $0x1b0] sm:$0xff]  ;;  %v414_v30 = vld [vmem:[#allocation5 + $0xb18] sm:$0xff] }
 0x101   :  { %1350 = vmatpush.msra.mxu0 %v185_v36  ;;  %1370 = vmatpush.msra.mxu1 %v377_v37  ;;  %v305_v61 = vld [vmem:[#allocation5 + $0x7b0] sm:$0xff]  ;;  %v606_v31 = vld [vmem:[#allocation5 + $0x1118] sm:$0xff] }
 0x102   :  { %1390 = vmatpush.msra.mxu2 %v569_v38  ;;  %1409 = vmatpush.msra.mxu3 %v773_v39  ;;  %v497_v62 = vld [vmem:[#allocation5 + $0xdb0] sm:$0xff]  ;;  %v810_v32 = vld [vmem:[#allocation5 + $0x1778] sm:$0xff] }
 0x103   :  { %1351 = vmatpush.msra.mxu0 %v173_v40  ;;  %1371 = vmatpush.msra.mxu1 %v365_v41  ;;  %v701_v63 = vld [vmem:[#allocation5 + $0x1410] sm:$0xff]  ;;  %v210_v8 = vld [vmem:[#allocation5 + $0x4b8] sm:$0xff] }
 0x104   :  { %1391 = vmatpush.msra.mxu2 %v557_v42  ;;  %1410 = vmatpush.msra.mxu3 %v761_v43  ;;  %v101_v3 = vld [vmem:[#allocation5 + $0x150] sm:$0xff]  ;;  %v402_v33 = vld [vmem:[#allocation5 + $0xab8] sm:$0xff] }
 0x105   :  { %1352 = vmatpush.msra.mxu0 %v161_v44  ;;  %1372 = vmatpush.msra.mxu1 %v353_v45  ;;  %v293_v4 = vld [vmem:[#allocation5 + $0x750] sm:$0xff]  ;;  %v594_v34 = vld [vmem:[#allocation5 + $0x10b8] sm:$0xff] }
 0x106   :  { %1392 = vmatpush.msra.mxu2 %v545_v46  ;;  %1411 = vmatpush.msra.mxu3 %v749_v47  ;;  %v485_v5 = vld [vmem:[#allocation5 + $0xd50] sm:$0xff]  ;;  %v798_v35 = vld [vmem:[#allocation5 + $0x1718] sm:$0xff] }
 0x107   :  { %1353 = vmatpush.msra.mxu0 %v149_v48  ;;  %1373 = vmatpush.msra.mxu1 %v341_v49  ;;  %v689_v6 = vld [vmem:[#allocation5 + $0x13b0] sm:$0xff]  ;;  %v198_v36 = vld [vmem:[#allocation5 + $0x458] sm:$0xff] }
 0x108   :  { %1393 = vmatpush.msra.mxu2 %v533_v50  ;;  %1412 = vmatpush.msra.mxu3 %v737_v51  ;;  %v89_v7 = vld [vmem:[#allocation5 + $0xf0] sm:$0xff]  ;;  %v390_v37 = vld [vmem:[#allocation5 + $0xa58] sm:$0xff] }
 0x109   :  { %1354 = vmatpush.msra.mxu0 %v137_v52  ;;  %1374 = vmatpush.msra.mxu1 %v329_v53  ;;  %v281_v9 = vld [vmem:[#allocation5 + $0x6f0] sm:$0xff]  ;;  %v582_v38 = vld [vmem:[#allocation5 + $0x1058] sm:$0xff] }
 0x10a   :  { %1394 = vmatpush.msra.mxu2 %v521_v54  ;;  %1413 = vmatpush.msra.mxu3 %v725_v55  ;;  %v473_v10 = vld [vmem:[#allocation5 + $0xcf0] sm:$0xff]  ;;  %v786_v39 = vld [vmem:[#allocation5 + $0x16b8] sm:$0xff] }
 0x10b   :  { %1355 = vmatpush.msra.mxu0 %v125_v56  ;;  %1375 = vmatpush.msra.mxu1 %v317_v57  ;;  %v677_v11 = vld [vmem:[#allocation5 + $0x1350] sm:$0xff]  ;;  %v186_v40 = vld [vmem:[#allocation5 + $0x3f8] sm:$0xff] }
 0x10c   :  { %1395 = vmatpush.msra.mxu2 %v509_v58  ;;  %1414 = vmatpush.msra.mxu3 %v713_v59  ;;  %v77_v12 = vld [vmem:[#allocation5 + $0x90] sm:$0xff]  ;;  %v378_v41 = vld [vmem:[#allocation5 + $0x9f8] sm:$0xff] }
 0x10d   :  { %1356 = vmatpush.msra.mxu0 %v113_v60  ;;  %1376 = vmatpush.msra.mxu1 %v305_v61  ;;  %v269_v13 = vld [vmem:[#allocation5 + $0x690] sm:$0xff]  ;;  %v570_v42 = vld [vmem:[#allocation5 + $0xff8] sm:$0xff] }
 0x10e   :  { %1396 = vmatpush.msra.mxu2 %v497_v62  ;;  %1415 = vmatpush.msra.mxu3 %v701_v63  ;;  %v461_v14 = vld [vmem:[#allocation5 + $0xc90] sm:$0xff]  ;;  %v774_v43 = vld [vmem:[#allocation5 + $0x1658] sm:$0xff] }
 0x10f   :  { %1357 = vmatpush.msra.mxu0 %v101_v3  ;;  %1377 = vmatpush.msra.mxu1 %v293_v4  ;;  %v665_v15 = vld [vmem:[#allocation5 + $0x12f0] sm:$0xff]  ;;  %v174_v44 = vld [vmem:[#allocation5 + $0x398] sm:$0xff] }
 0x110   :  { %1397 = vmatpush.msra.mxu2 %v485_v5  ;;  %1416 = vmatpush.msra.mxu3 %v689_v6  ;;  %v65_v16 = vld [vmem:[#allocation5 + $0x30] sm:$0xff]  ;;  %v366_v45 = vld [vmem:[#allocation5 + $0x998] sm:$0xff] }
 0x111   :  { %1358 = vmatpush.msra.mxu0 %v89_v7  ;;  %1378 = vmatpush.msra.mxu1 %v281_v9  ;;  %v257_v17 = vld [vmem:[#allocation5 + $0x630] sm:$0xff]  ;;  %v558_v46 = vld [vmem:[#allocation5 + $0xf98] sm:$0xff] }
 0x112   :  { %1398 = vmatpush.msra.mxu2 %v473_v10  ;;  %1417 = vmatpush.msra.mxu3 %v677_v11  ;;  %v449_v18 = vld [vmem:[#allocation5 + $0xc30] sm:$0xff]  ;;  %v762_v47 = vld [vmem:[#allocation5 + $0x15f8] sm:$0xff] }
 0x113   :  { %1359 = vmatpush.msra.mxu0 %v77_v12  ;;  %1379 = vmatpush.msra.mxu1 %v269_v13  ;;  %v653_v21 = vld [vmem:[#allocation5 + $0x1290] sm:$0xff]  ;;  %v162_v48 = vld [vmem:[#allocation5 + $0x338] sm:$0xff] }
 0x114   :  { %1399 = vmatpush.msra.mxu2 %v461_v14  ;;  %1418 = vmatpush.msra.mxu3 %v665_v15  ;;  %v641_v0 = vld [vmem:[#allocation5 + $0x1230] sm:$0xff]  ;;  %v354_v49 = vld [vmem:[#allocation5 + $0x938] sm:$0xff] }
 0x115   :  { %1360 = vmatpush.msra.mxu0 %v65_v16  ;;  %1380 = vmatpush.msra.mxu1 %v257_v17  ;;  %v546_v50 = vld [vmem:[#allocation5 + $0xf38] sm:$0xff] }
 0x116   :  { %1400 = vmatpush.msra.mxu2 %v449_v18  ;;  %1419 = vmatpush.msra.mxu3 %v653_v21  ;;  %v750_v51 = vld [vmem:[#allocation5 + $0x1598] sm:$0xff] }
 0x117   :  { %1281 = vmatmul.f32.vlgmr.msrb.gmra.mxu0 %v2237_v19  ;;  %1301 = vmatmul.f32.vlgmr.msrb.gmra.mxu1 %v2240_v20  ;;  %v150_v52 = vld [vmem:[#allocation5 + $0x2d8] sm:$0xff] }
 0x118   :  { %1321 = vmatmul.f32.vlgmr.msrb.gmra.mxu2 %v2243_v23  ;;  %1425 = vmatpush.msrb.mxu0 %v246_v22  ;;  %v342_v53 = vld [vmem:[#allocation5 + $0x8d8] sm:$0xff] }
 0x119   :  { %1445 = vmatpush.msrb.mxu1 %v438_v24  ;;  %1465 = vmatpush.msrb.mxu2 %v630_v25  ;;  %v534_v54 = vld [vmem:[#allocation5 + $0xed8] sm:$0xff] }
 0x11a   :  { %1420 = vmatpush.msra.mxu3 %v641_v0  ;;  %1426 = vmatpush.msrb.mxu0 %v234_v26  ;;  %v738_v55 = vld [vmem:[#allocation5 + $0x1538] sm:$0xff]  ;;  %v247_v26 = vld [vmem:[#allocation5 + $0x5e0] sm:$0xff] }
 0x11b   :  { %1341 = vmatmul.f32.vlgmr.msrb.gmra.mxu3 %v2246_v27  ;;  %1446 = vmatpush.msrb.mxu1 %v426_v1  ;;  %v138_v56 = vld [vmem:[#allocation5 + $0x278] sm:$0xff]  ;;  %v439_v1 = vld [vmem:[#allocation5 + $0xbe0] sm:$0xff] }
 0x11c   :  { %1466 = vmatpush.msrb.mxu2 %v618_v2  ;;  %1485 = vmatpush.msrb.mxu3 %v822_v28  ;;  %v330_v57 = vld [vmem:[#allocation5 + $0x878] sm:$0xff]  ;;  %v631_v2 = vld [vmem:[#allocation5 + $0x11e0] sm:$0xff] }
 0x11d   :  { %1427 = vmatpush.msrb.mxu0 %v222_v29  ;;  %1447 = vmatpush.msrb.mxu1 %v414_v30  ;;  %v522_v58 = vld [vmem:[#allocation5 + $0xe78] sm:$0xff]  ;;  %v235_v29 = vld [vmem:[#allocation5 + $0x580] sm:$0xff] }
 0x11e   :  { %1467 = vmatpush.msrb.mxu2 %v606_v31  ;;  %1486 = vmatpush.msrb.mxu3 %v810_v32  ;;  %v726_v59 = vld [vmem:[#allocation5 + $0x14d8] sm:$0xff]  ;;  %v427_v30 = vld [vmem:[#allocation5 + $0xb80] sm:$0xff] }
 0x11f   :  { %1428 = vmatpush.msrb.mxu0 %v210_v8  ;;  %1448 = vmatpush.msrb.mxu1 %v402_v33  ;;  %v126_v60 = vld [vmem:[#allocation5 + $0x218] sm:$0xff]  ;;  %v619_v31 = vld [vmem:[#allocation5 + $0x1180] sm:$0xff] }
 0x120   :  { %1468 = vmatpush.msrb.mxu2 %v594_v34  ;;  %1487 = vmatpush.msrb.mxu3 %v798_v35  ;;  %v318_v61 = vld [vmem:[#allocation5 + $0x818] sm:$0xff]  ;;  %v223_v32 = vld [vmem:[#allocation5 + $0x520] sm:$0xff] }
 0x121   :  { %1429 = vmatpush.msrb.mxu0 %v198_v36  ;;  %1449 = vmatpush.msrb.mxu1 %v390_v37  ;;  %v510_v62 = vld [vmem:[#allocation5 + $0xe18] sm:$0xff]  ;;  %v415_v8 = vld [vmem:[#allocation5 + $0xb20] sm:$0xff] }
 0x122   :  { %1469 = vmatpush.msrb.mxu2 %v582_v38  ;;  %1488 = vmatpush.msrb.mxu3 %v786_v39  ;;  %v714_v63 = vld [vmem:[#allocation5 + $0x1478] sm:$0xff]  ;;  %v607_v33 = vld [vmem:[#allocation5 + $0x1120] sm:$0xff] }
 0x123   :  { %1430 = vmatpush.msrb.mxu0 %v186_v40  ;;  %1450 = vmatpush.msrb.mxu1 %v378_v41  ;;  %v114_v3 = vld [vmem:[#allocation5 + $0x1b8] sm:$0xff]  ;;  %v211_v34 = vld [vmem:[#allocation5 + $0x4c0] sm:$0xff] }
 0x124   :  { %1470 = vmatpush.msrb.mxu2 %v570_v42  ;;  %1489 = vmatpush.msrb.mxu3 %v774_v43  ;;  %v306_v4 = vld [vmem:[#allocation5 + $0x7b8] sm:$0xff]  ;;  %v823_v35 = vld [vmem:[#allocation5 + $0x17e0] sm:$0xff] }
 0x125   :  { %1431 = vmatpush.msrb.mxu0 %v174_v44  ;;  %1451 = vmatpush.msrb.mxu1 %v366_v45  ;;  %v498_v5 = vld [vmem:[#allocation5 + $0xdb8] sm:$0xff]  ;;  %v595_v36 = vld [vmem:[#allocation5 + $0x10c0] sm:$0xff] }
 0x126   :  { %1471 = vmatpush.msrb.mxu2 %v558_v46  ;;  %1490 = vmatpush.msrb.mxu3 %v762_v47  ;;  %v702_v6 = vld [vmem:[#allocation5 + $0x1418] sm:$0xff]  ;;  %v199_v37 = vld [vmem:[#allocation5 + $0x460] sm:$0xff] }
 0x127   :  { %1432 = vmatpush.msrb.mxu0 %v162_v48  ;;  %1452 = vmatpush.msrb.mxu1 %v354_v49  ;;  %v102_v7 = vld [vmem:[#allocation5 + $0x158] sm:$0xff]  ;;  %v811_v38 = vld [vmem:[#allocation5 + $0x1780] sm:$0xff] }
 0x128   :  { %1472 = vmatpush.msrb.mxu2 %v546_v50  ;;  %1491 = vmatpush.msrb.mxu3 %v750_v51  ;;  %v294_v9 = vld [vmem:[#allocation5 + $0x758] sm:$0xff]  ;;  %v187_v39 = vld [vmem:[#allocation5 + $0x400] sm:$0xff] }
 0x129   :  { %1433 = vmatpush.msrb.mxu0 %v150_v52  ;;  %1453 = vmatpush.msrb.mxu1 %v342_v53  ;;  %v486_v10 = vld [vmem:[#allocation5 + $0xd58] sm:$0xff]  ;;  %v799_v40 = vld [vmem:[#allocation5 + $0x1720] sm:$0xff] }
 0x12a   :  { %1473 = vmatpush.msrb.mxu2 %v534_v54  ;;  %1492 = vmatpush.msrb.mxu3 %v738_v55  ;;  %v690_v11 = vld [vmem:[#allocation5 + $0x13b8] sm:$0xff]  ;;  %v379_v41 = vld [vmem:[#allocation5 + $0xa00] sm:$0xff] }
 0x12b   :  { %1434 = vmatpush.msrb.mxu0 %v138_v56  ;;  %1454 = vmatpush.msrb.mxu1 %v330_v57  ;;  %v90_v12 = vld [vmem:[#allocation5 + $0xf8] sm:$0xff]  ;;  %v571_v42 = vld [vmem:[#allocation5 + $0x1000] sm:$0xff] }
 0x12c   :  { %1474 = vmatpush.msrb.mxu2 %v522_v58  ;;  %1493 = vmatpush.msrb.mxu3 %v726_v59  ;;  %v282_v13 = vld [vmem:[#allocation5 + $0x6f8] sm:$0xff]  ;;  %v787_v43 = vld [vmem:[#allocation5 + $0x16c0] sm:$0xff] }
 0x12d   :  { %1435 = vmatpush.msrb.mxu0 %v126_v60  ;;  %1455 = vmatpush.msrb.mxu1 %v318_v61  ;;  %v474_v14 = vld [vmem:[#allocation5 + $0xcf8] sm:$0xff]  ;;  %v367_v44 = vld [vmem:[#allocation5 + $0x9a0] sm:$0xff] }
 0x12e   :  { %1475 = vmatpush.msrb.mxu2 %v510_v62  ;;  %1494 = vmatpush.msrb.mxu3 %v714_v63  ;;  %v678_v15 = vld [vmem:[#allocation5 + $0x1358] sm:$0xff]  ;;  %v559_v45 = vld [vmem:[#allocation5 + $0xfa0] sm:$0xff] }
 0x12f   :  { %1436 = vmatpush.msrb.mxu0 %v114_v3  ;;  %1456 = vmatpush.msrb.mxu1 %v306_v4  ;;  %v78_v16 = vld [vmem:[#allocation5 + $0x98] sm:$0xff]  ;;  %v163_v46 = vld [vmem:[#allocation5 + $0x340] sm:$0xff] }
 0x130   :  { %1476 = vmatpush.msrb.mxu2 %v498_v5  ;;  %1495 = vmatpush.msrb.mxu3 %v702_v6  ;;  %v270_v17 = vld [vmem:[#allocation5 + $0x698] sm:$0xff]  ;;  %v775_v47 = vld [vmem:[#allocation5 + $0x1660] sm:$0xff] }
 0x131   :  { %1401 = vmatmul.f32.vlgmr.msra.gmra.mxu2 %v2243_v23  ;;  %1437 = vmatpush.msrb.mxu0 %v102_v7  ;;  %v462_v18 = vld [vmem:[#allocation5 + $0xc98] sm:$0xff]  ;;  %v355_v48 = vld [vmem:[#allocation5 + $0x940] sm:$0xff] }
 0x132   :  { %1457 = vmatpush.msrb.mxu1 %v294_v9  ;;  %1477 = vmatpush.msrb.mxu2 %v486_v10  ;;  %v666_v21 = vld [vmem:[#allocation5 + $0x12f8] sm:$0xff]  ;;  %v547_v49 = vld [vmem:[#allocation5 + $0xf40] sm:$0xff] }
 0x133   :  { %1496 = vmatpush.msrb.mxu3 %v690_v11  ;;  %1361 = vmatmul.f32.vlgmr.msra.gmra.mxu0 %v2237_v19  ;;  %v66_v22 = vld [vmem:[#allocation5 + $0x38] sm:$0xff]  ;;  %v151_v50 = vld [vmem:[#allocation5 + $0x2e0] sm:$0xff] }
 0x134   :  { %1421 = vmatmul.f32.vlgmr.msra.gmra.mxu3 %v2246_v27  ;;  %1438 = vmatpush.msrb.mxu0 %v90_v12  ;;  %v258_v24 = vld [vmem:[#allocation5 + $0x638] sm:$0xff]  ;;  %v763_v51 = vld [vmem:[#allocation5 + $0x1600] sm:$0xff] }
 0x135   :  { %1458 = vmatpush.msrb.mxu1 %v282_v13  ;;  %1478 = vmatpush.msrb.mxu2 %v474_v14  ;;  %v450_v25 = vld [vmem:[#allocation5 + $0xc38] sm:$0xff]  ;;  %v343_v52 = vld [vmem:[#allocation5 + $0x8e0] sm:$0xff] }
 0x136   :  { %1497 = vmatpush.msrb.mxu3 %v678_v15  ;;  %1381 = vmatmul.f32.vlgmr.msra.gmra.mxu1 %v2240_v20  ;;  %v654_v0 = vld [vmem:[#allocation5 + $0x1298] sm:$0xff]  ;;  %v535_v53 = vld [vmem:[#allocation5 + $0xee0] sm:$0xff] }
 0x137   :  { %1439 = vmatpush.msrb.mxu0 %v78_v16  ;;  %1459 = vmatpush.msrb.mxu1 %v270_v17  ;;  %v642_v28 = vld [vmem:[#allocation5 + $0x1238] sm:$0xff]  ;;  %v139_v54 = vld [vmem:[#allocation5 + $0x280] sm:$0xff] }
 0x138   :  { %1479 = vmatpush.msrb.mxu2 %v462_v18  ;;  %1498 = vmatpush.msrb.mxu3 %v666_v21  ;;  %v751_v55 = vld [vmem:[#allocation5 + $0x15a0] sm:$0xff] }
 0x139   :  { %1440 = vmatpush.msrb.mxu0 %v66_v22  ;;  %1460 = vmatpush.msrb.mxu1 %v258_v24  ;;  %v331_v56 = vld [vmem:[#allocation5 + $0x880] sm:$0xff] }
 0x13a   :  { %1480 = vmatpush.msrb.mxu2 %v450_v25  ;;  %1499 = vmatpush.msrb.mxu3 %v654_v0  ;;  %v523_v57 = vld [vmem:[#allocation5 + $0xe80] sm:$0xff]  ;;  %v248_v25 = vld [vmem:[#allocation5 + $0x5e8] sm:$0xff] }
 0x13b   :  { %1481 = vmatmul.f32.vlgmr.msrb.gmra.mxu2 %v2243_v23  ;;  %1505 = vmatpush.msra.mxu0 %v247_v26  ;;  %v403_v23 = vld [vmem:[#allocation5 + $0xac0] sm:$0xff]  ;;  %v440_v0 = vld [vmem:[#allocation5 + $0xbe8] sm:$0xff] }
 0x13c   :  { %1525 = vmatpush.msra.mxu1 %v439_v1  ;;  %1545 = vmatpush.msra.mxu2 %v631_v2  ;;  %v127_v58 = vld [vmem:[#allocation5 + $0x220] sm:$0xff]  ;;  %v632_v26 = vld [vmem:[#allocation5 + $0x11e8] sm:$0xff] }
 0x13d   :  { %1500 = vmatpush.msrb.mxu3 %v642_v28  ;;  %1441 = vmatmul.f32.vlgmr.msrb.gmra.mxu0 %v2237_v19  ;;  %v391_v19 = vld [vmem:[#allocation5 + $0xa60] sm:$0xff]  ;;  %v236_v2 = vld [vmem:[#allocation5 + $0x588] sm:$0xff] }
 0x13e   :  { %1501 = vmatmul.f32.vlgmr.msrb.gmra.mxu3 %v2246_v27  ;;  %1506 = vmatpush.msra.mxu0 %v235_v29  ;;  %v583_v27 = vld [vmem:[#allocation5 + $0x1060] sm:$0xff]  ;;  %v428_v28 = vld [vmem:[#allocation5 + $0xb88] sm:$0xff] }
 0x13f   :  { %1526 = vmatpush.msra.mxu1 %v427_v30  ;;  %1546 = vmatpush.msra.mxu2 %v619_v31  ;;  %v739_v59 = vld [vmem:[#allocation5 + $0x1540] sm:$0xff]  ;;  %v620_v29 = vld [vmem:[#allocation5 + $0x1188] sm:$0xff] }
 0x140   :  { %1461 = vmatmul.f32.vlgmr.msrb.gmra.mxu1 %v2240_v20  ;;  %1507 = vmatpush.msra.mxu0 %v223_v32  ;;  %v175_v20 = vld [vmem:[#allocation5 + $0x3a0] sm:$0xff]  ;;  %v224_v31 = vld [vmem:[#allocation5 + $0x528] sm:$0xff] }
 0x141   :  { %1527 = vmatpush.msra.mxu1 %v415_v8  ;;  %1547 = vmatpush.msra.mxu2 %v607_v33  ;;  %v319_v60 = vld [vmem:[#allocation5 + $0x820] sm:$0xff]  ;;  %v416_v32 = vld [vmem:[#allocation5 + $0xb28] sm:$0xff] }
 0x142   :  { %1508 = vmatpush.msra.mxu0 %v211_v34  ;;  %1565 = vmatpush.msra.mxu3 %v823_v35  ;;  %v511_v61 = vld [vmem:[#allocation5 + $0xe20] sm:$0xff]  ;;  %v608_v8 = vld [vmem:[#allocation5 + $0x1128] sm:$0xff] }
 0x143   :  { %1528 = vmatpush.msra.mxu1 %v403_v23  ;;  %1548 = vmatpush.msra.mxu2 %v595_v36  ;;  %v115_v62 = vld [vmem:[#allocation5 + $0x1c0] sm:$0xff]  ;;  %v212_v34 = vld [vmem:[#allocation5 + $0x4c8] sm:$0xff] }
 0x144   :  { %1509 = vmatpush.msra.mxu0 %v199_v37  ;;  %1566 = vmatpush.msra.mxu3 %v811_v38  ;;  %v727_v63 = vld [vmem:[#allocation5 + $0x14e0] sm:$0xff]  ;;  %v404_v35 = vld [vmem:[#allocation5 + $0xac8] sm:$0xff] }
 0x145   :  { %1529 = vmatpush.msra.mxu1 %v391_v19  ;;  %1549 = vmatpush.msra.mxu2 %v583_v27  ;;  %v307_v3 = vld [vmem:[#allocation5 + $0x7c0] sm:$0xff]  ;;  %v596_v23 = vld [vmem:[#allocation5 + $0x10c8] sm:$0xff] }
 0x146   :  { %1510 = vmatpush.msra.mxu0 %v187_v39  ;;  %1567 = vmatpush.msra.mxu3 %v799_v40  ;;  %v499_v4 = vld [vmem:[#allocation5 + $0xdc0] sm:$0xff]  ;;  %v824_v36 = vld [vmem:[#allocation5 + $0x17e8] sm:$0xff] }
 0x147   :  { %1530 = vmatpush.msra.mxu1 %v379_v41  ;;  %1550 = vmatpush.msra.mxu2 %v571_v42  ;;  %v103_v5 = vld [vmem:[#allocation5 + $0x160] sm:$0xff]  ;;  %v200_v37 = vld [vmem:[#allocation5 + $0x468] sm:$0xff] }
 0x148   :  { %1511 = vmatpush.msra.mxu0 %v175_v20  ;;  %1568 = vmatpush.msra.mxu3 %v787_v43  ;;  %v715_v6 = vld [vmem:[#allocation5 + $0x1480] sm:$0xff]  ;;  %v392_v38 = vld [vmem:[#allocation5 + $0xa68] sm:$0xff] }
 0x149   :  { %1531 = vmatpush.msra.mxu1 %v367_v44  ;;  %1551 = vmatpush.msra.mxu2 %v559_v45  ;;  %v295_v7 = vld [vmem:[#allocation5 + $0x760] sm:$0xff]  ;;  %v584_v19 = vld [vmem:[#allocation5 + $0x1068] sm:$0xff] }
 0x14a   :  { %1512 = vmatpush.msra.mxu0 %v163_v46  ;;  %1569 = vmatpush.msra.mxu3 %v775_v47  ;;  %v487_v9 = vld [vmem:[#allocation5 + $0xd60] sm:$0xff]  ;;  %v812_v27 = vld [vmem:[#allocation5 + $0x1788] sm:$0xff] }
 0x14b   :  { %1532 = vmatpush.msra.mxu1 %v355_v48  ;;  %1552 = vmatpush.msra.mxu2 %v547_v49  ;;  %v91_v10 = vld [vmem:[#allocation5 + $0x100] sm:$0xff]  ;;  %v188_v39 = vld [vmem:[#allocation5 + $0x408] sm:$0xff] }
 0x14c   :  { %1513 = vmatpush.msra.mxu0 %v151_v50  ;;  %1570 = vmatpush.msra.mxu3 %v763_v51  ;;  %v703_v11 = vld [vmem:[#allocation5 + $0x1420] sm:$0xff]  ;;  %v380_v40 = vld [vmem:[#allocation5 + $0xa08] sm:$0xff] }
 0x14d   :  { %1533 = vmatpush.msra.mxu1 %v343_v52  ;;  %1553 = vmatpush.msra.mxu2 %v535_v53  ;;  %v283_v12 = vld [vmem:[#allocation5 + $0x700] sm:$0xff]  ;;  %v572_v41 = vld [vmem:[#allocation5 + $0x1008] sm:$0xff] }
 0x14e   :  { %1514 = vmatpush.msra.mxu0 %v139_v54  ;;  %1571 = vmatpush.msra.mxu3 %v751_v55  ;;  %v475_v13 = vld [vmem:[#allocation5 + $0xd00] sm:$0xff]  ;;  %v800_v42 = vld [vmem:[#allocation5 + $0x1728] sm:$0xff] }
 0x14f   :  { %1534 = vmatpush.msra.mxu1 %v331_v56  ;;  %1554 = vmatpush.msra.mxu2 %v523_v57  ;;  %v79_v14 = vld [vmem:[#allocation5 + $0xa0] sm:$0xff]  ;;  %v176_v20 = vld [vmem:[#allocation5 + $0x3a8] sm:$0xff] }
 0x150   :  { %1515 = vmatpush.msra.mxu0 %v127_v58  ;;  %1572 = vmatpush.msra.mxu3 %v739_v59  ;;  %v691_v15 = vld [vmem:[#allocation5 + $0x13c0] sm:$0xff]  ;;  %v368_v43 = vld [vmem:[#allocation5 + $0x9a8] sm:$0xff] }
 0x151   :  { %1535 = vmatpush.msra.mxu1 %v319_v60  ;;  %1555 = vmatpush.msra.mxu2 %v511_v61  ;;  %v271_v16 = vld [vmem:[#allocation5 + $0x6a0] sm:$0xff]  ;;  %v560_v44 = vld [vmem:[#allocation5 + $0xfa8] sm:$0xff] }
 0x152   :  { %1516 = vmatpush.msra.mxu0 %v115_v62  ;;  %1573 = vmatpush.msra.mxu3 %v727_v63  ;;  %v463_v17 = vld [vmem:[#allocation5 + $0xca0] sm:$0xff]  ;;  %v788_v45 = vld [vmem:[#allocation5 + $0x16c8] sm:$0xff] }
 0x153   :  { %1536 = vmatpush.msra.mxu1 %v307_v3  ;;  %1556 = vmatpush.msra.mxu2 %v499_v4  ;;  %v67_v18 = vld [vmem:[#allocation5 + $0x40] sm:$0xff]  ;;  %v164_v46 = vld [vmem:[#allocation5 + $0x348] sm:$0xff] }
 0x154   :  { %1517 = vmatpush.msra.mxu0 %v103_v5  ;;  %1574 = vmatpush.msra.mxu3 %v715_v6  ;;  %v679_v21 = vld [vmem:[#allocation5 + $0x1360] sm:$0xff]  ;;  %v356_v47 = vld [vmem:[#allocation5 + $0x948] sm:$0xff] }
 0x155   :  { %1537 = vmatpush.msra.mxu1 %v295_v7  ;;  %1557 = vmatpush.msra.mxu2 %v487_v9  ;;  %v259_v22 = vld [vmem:[#allocation5 + $0x640] sm:$0xff]  ;;  %v548_v48 = vld [vmem:[#allocation5 + $0xf48] sm:$0xff] }
 0x156   :  { %1518 = vmatpush.msra.mxu0 %v91_v10  ;;  %1575 = vmatpush.msra.mxu3 %v703_v11  ;;  %v451_v24 = vld [vmem:[#allocation5 + $0xc40] sm:$0xff]  ;;  %v776_v49 = vld [vmem:[#allocation5 + $0x1668] sm:$0xff] }
 0x157   :  { %1538 = vmatpush.msra.mxu1 %v283_v12  ;;  %1558 = vmatpush.msra.mxu2 %v475_v13  ;;  %v667_v1 = vld [vmem:[#allocation5 + $0x1300] sm:$0xff]  ;;  %v152_v50 = vld [vmem:[#allocation5 + $0x2e8] sm:$0xff] }
 0x158   :  { %1519 = vmatpush.msra.mxu0 %v79_v14  ;;  %1576 = vmatpush.msra.mxu3 %v691_v15  ;;  %v655_v30 = vld [vmem:[#allocation5 + $0x12a0] sm:$0xff]  ;;  %v344_v51 = vld [vmem:[#allocation5 + $0x8e8] sm:$0xff] }
 0x159   :  { %1539 = vmatpush.msra.mxu1 %v271_v16  ;;  %1559 = vmatpush.msra.mxu2 %v463_v17  ;;  %v643_v33 = vld [vmem:[#allocation5 + $0x1240] sm:$0xff]  ;;  %v536_v52 = vld [vmem:[#allocation5 + $0xee8] sm:$0xff] }
 0x15a   :  { %1520 = vmatpush.msra.mxu0 %v67_v18  ;;  %1577 = vmatpush.msra.mxu3 %v679_v21  ;;  %v764_v53 = vld [vmem:[#allocation5 + $0x1608] sm:$0xff] }
 0x15b   :  { %1540 = vmatpush.msra.mxu1 %v259_v22  ;;  %1560 = vmatpush.msra.mxu2 %v451_v24  ;;  %v140_v54 = vld [vmem:[#allocation5 + $0x288] sm:$0xff] }
 0x15c   :  { %1585 = vmatpush.msrb.mxu0 %v248_v25  ;;  %1578 = vmatpush.msra.mxu3 %v667_v1  ;;  %v332_v55 = vld [vmem:[#allocation5 + $0x888] sm:$0xff]  ;;  %v249_v25 = vld [vmem:[#allocation5 + $0x5f0] sm:$0xff] }
 0x15d   :  { %1605 = vmatpush.msrb.mxu1 %v440_v0  ;;  %1625 = vmatpush.msrb.mxu2 %v632_v26  ;;  %v524_v56 = vld [vmem:[#allocation5 + $0xe88] sm:$0xff]  ;;  %v2261_v0 = vld.sshfl [vmem:[#allocation1] sm:$0xff pattern:$0x73625140] }
 0x15e   :  { %1586 = vmatpush.msrb.mxu0 %v236_v2  ;;  %1579 = vmatpush.msra.mxu3 %v655_v30  ;;  %v752_v57 = vld [vmem:[#allocation5 + $0x15a8] sm:$0xff]  ;;  %v441_v26 = vld [vmem:[#allocation5 + $0xbf0] sm:$0xff]  ;;  %v2264_v2 = vld.sshfl [vmem:[#allocation1 + $0x8] sm:$0xff pattern:$0x73625140] }
 0x15f   :  { %1606 = vmatpush.msrb.mxu1 %v428_v28  ;;  %1626 = vmatpush.msrb.mxu2 %v620_v29  ;;  %v128_v58 = vld [vmem:[#allocation5 + $0x228] sm:$0xff]  ;;  %v633_v1 = vld [vmem:[#allocation5 + $0x11f0] sm:$0xff]  ;;  %v2267_v28 = vld.sshfl [vmem:[#allocation1 + $0x10] sm:$0xff pattern:$0x73625140] }
 0x160   :  { %1587 = vmatpush.msrb.mxu0 %v224_v31  ;;  %1580 = vmatpush.msra.mxu3 %v643_v33  ;;  %v320_v59 = vld [vmem:[#allocation5 + $0x828] sm:$0xff]  ;;  %v237_v30 = vld [vmem:[#allocation5 + $0x590] sm:$0xff] }
 0x161   :  { %1607 = vmatpush.msrb.mxu1 %v416_v32  ;;  %1627 = vmatpush.msrb.mxu2 %v608_v8  ;;  %v512_v60 = vld [vmem:[#allocation5 + $0xe28] sm:$0xff]  ;;  %v429_v31 = vld [vmem:[#allocation5 + $0xb90] sm:$0xff] }
 0x162   :  { %1588 = vmatpush.msrb.mxu0 %v212_v34  ;;  %1645 = vmatpush.msrb.mxu3 %v824_v36  ;;  %v740_v61 = vld [vmem:[#allocation5 + $0x1548] sm:$0xff]  ;;  %v621_v32 = vld [vmem:[#allocation5 + $0x1190] sm:$0xff] }
 0x163   :  { %1608 = vmatpush.msrb.mxu1 %v404_v35  ;;  %1628 = vmatpush.msrb.mxu2 %v596_v23  ;;  %v116_v62 = vld [vmem:[#allocation5 + $0x1c8] sm:$0xff]  ;;  %v225_v33 = vld [vmem:[#allocation5 + $0x530] sm:$0xff]  ;;  %v2270_v23 = vpop.f32.mrf.mxu0 }
 0x164   :  { %1589 = vmatpush.msrb.mxu0 %v200_v37  ;;  %1646 = vmatpush.msrb.mxu3 %v812_v27  ;;  %v308_v63 = vld [vmem:[#allocation5 + $0x7c8] sm:$0xff]  ;;  %v417_v34 = vld [vmem:[#allocation5 + $0xb30] sm:$0xff] }
 0x165   :  { %1609 = vmatpush.msrb.mxu1 %v392_v38  ;;  %1629 = vmatpush.msrb.mxu2 %v584_v19  ;;  %v500_v3 = vld [vmem:[#allocation5 + $0xdc8] sm:$0xff]  ;;  %v609_v35 = vld [vmem:[#allocation5 + $0x1130] sm:$0xff] }
 0x166   :  { %1590 = vmatpush.msrb.mxu0 %v188_v39  ;;  %1647 = vmatpush.msrb.mxu3 %v800_v42  ;;  %v728_v4 = vld [vmem:[#allocation5 + $0x14e8] sm:$0xff]  ;;  %v213_v37 = vld [vmem:[#allocation5 + $0x4d0] sm:$0xff]  ;;  %v2272_v39 = vpop.f32.mrf.mxu1 }
 0x167   :  { %1610 = vmatpush.msrb.mxu1 %v380_v40  ;;  %1630 = vmatpush.msrb.mxu2 %v572_v41  ;;  %v104_v5 = vld [vmem:[#allocation5 + $0x168] sm:$0xff]  ;;  %v405_v38 = vld [vmem:[#allocation5 + $0xad0] sm:$0xff] }
 0x168   :  { %1591 = vmatpush.msrb.mxu0 %v176_v20  ;;  %1648 = vmatpush.msrb.mxu3 %v788_v45  ;;  %v296_v6 = vld [vmem:[#allocation5 + $0x768] sm:$0xff]  ;;  %v597_v19 = vld [vmem:[#allocation5 + $0x10d0] sm:$0xff] }
 0x169   :  { %1611 = vmatpush.msrb.mxu1 %v368_v43  ;;  %1631 = vmatpush.msrb.mxu2 %v560_v44  ;;  %v488_v7 = vld [vmem:[#allocation5 + $0xd68] sm:$0xff]  ;;  %v201_v27 = vld [vmem:[#allocation5 + $0x470] sm:$0xff] }
 0x16a   :  { %1592 = vmatpush.msrb.mxu0 %v164_v46  ;;  %1649 = vmatpush.msrb.mxu3 %v776_v49  ;;  %v716_v9 = vld [vmem:[#allocation5 + $0x1488] sm:$0xff]  ;;  %v825_v40 = vld [vmem:[#allocation5 + $0x17f0] sm:$0xff]  ;;  %v2277_v46 = vpop.f32.mrf.mxu2 }
 0x16b   :  { %1612 = vmatpush.msrb.mxu1 %v356_v47  ;;  %1632 = vmatpush.msrb.mxu2 %v548_v48  ;;  %v92_v10 = vld [vmem:[#allocation5 + $0x108] sm:$0xff]  ;;  %v393_v41 = vld [vmem:[#allocation5 + $0xa70] sm:$0xff] }
 0x16c   :  { %1593 = vmatpush.msrb.mxu0 %v152_v50  ;;  %1650 = vmatpush.msrb.mxu3 %v764_v53  ;;  %v284_v11 = vld [vmem:[#allocation5 + $0x708] sm:$0xff]  ;;  %v585_v42 = vld [vmem:[#allocation5 + $0x1070] sm:$0xff] }
 0x16d   :  { %1613 = vmatpush.msrb.mxu1 %v344_v51  ;;  %1633 = vmatpush.msrb.mxu2 %v536_v52  ;;  %v476_v12 = vld [vmem:[#allocation5 + $0xd08] sm:$0xff]  ;;  %v189_v20 = vld [vmem:[#allocation5 + $0x410] sm:$0xff]  ;;  %v2279_v51 = vpop.f32.mrf.mxu0 }
 0x16e   :  { %1594 = vmatpush.msrb.mxu0 %v140_v54  ;;  %1651 = vmatpush.msrb.mxu3 %v752_v57  ;;  %v704_v13 = vld [vmem:[#allocation5 + $0x1428] sm:$0xff]  ;;  %v813_v44 = vld [vmem:[#allocation5 + $0x1790] sm:$0xff] }
 0x16f   :  { %1614 = vmatpush.msrb.mxu1 %v332_v55  ;;  %1634 = vmatpush.msrb.mxu2 %v524_v56  ;;  %v80_v14 = vld [vmem:[#allocation5 + $0xa8] sm:$0xff]  ;;  %v381_v45 = vld [vmem:[#allocation5 + $0xa10] sm:$0xff]  ;;  %v2281_v56 = vpop.f32.mrf.mxu3 }
 0x170   :  { %1595 = vmatpush.msrb.mxu0 %v128_v58  ;;  %1652 = vmatpush.msrb.mxu3 %v740_v61  ;;  %v272_v15 = vld [vmem:[#allocation5 + $0x6a8] sm:$0xff]  ;;  %v573_v47 = vld [vmem:[#allocation5 + $0x1010] sm:$0xff] }
 0x171   :  { %1615 = vmatpush.msrb.mxu1 %v320_v59  ;;  %1635 = vmatpush.msrb.mxu2 %v512_v60  ;;  %v464_v16 = vld [vmem:[#allocation5 + $0xca8] sm:$0xff]  ;;  %v177_v48 = vld [vmem:[#allocation5 + $0x3b0] sm:$0xff]  ;;  %v2283_v59 = vpop.f32.mrf.mxu1 }
 0x172   :  { %1596 = vmatpush.msrb.mxu0 %v116_v62  ;;  %1653 = vmatpush.msrb.mxu3 %v728_v4  ;;  %v692_v17 = vld [vmem:[#allocation5 + $0x13c8] sm:$0xff]  ;;  %v801_v49 = vld [vmem:[#allocation5 + $0x1730] sm:$0xff] }
 0x173   :  { %1616 = vmatpush.msrb.mxu1 %v308_v63  ;;  %1636 = vmatpush.msrb.mxu2 %v500_v3  ;;  %v68_v18 = vld [vmem:[#allocation5 + $0x48] sm:$0xff]  ;;  %v369_v50 = vld [vmem:[#allocation5 + $0x9b0] sm:$0xff] }
 0x174   :  { %1597 = vmatpush.msrb.mxu0 %v104_v5  ;;  %1654 = vmatpush.msrb.mxu3 %v716_v9  ;;  %v260_v21 = vld [vmem:[#allocation5 + $0x648] sm:$0xff]  ;;  %v561_v52 = vld [vmem:[#allocation5 + $0xfb0] sm:$0xff]  ;;  %v2285_v5 = vpop.f32.mrf.mxu2 }
 0x175   :  { %1617 = vmatpush.msrb.mxu1 %v296_v6  ;;  %1637 = vmatpush.msrb.mxu2 %v488_v7  ;;  %v452_v22 = vld [vmem:[#allocation5 + $0xc48] sm:$0xff]  ;;  %v165_v53 = vld [vmem:[#allocation5 + $0x350] sm:$0xff] }
 0x176   :  { %1598 = vmatpush.msrb.mxu0 %v92_v10  ;;  %1655 = vmatpush.msrb.mxu3 %v704_v13  ;;  %v680_v24 = vld [vmem:[#allocation5 + $0x1368] sm:$0xff]  ;;  %v789_v54 = vld [vmem:[#allocation5 + $0x16d0] sm:$0xff] }
 0x177   :  { %1618 = vmatpush.msrb.mxu1 %v284_v11  ;;  %1638 = vmatpush.msrb.mxu2 %v476_v12  ;;  %v668_v29 = vld [vmem:[#allocation5 + $0x1308] sm:$0xff]  ;;  %v357_v55 = vld [vmem:[#allocation5 + $0x950] sm:$0xff]  ;;  %v2287_v11 = vpop.f32.mrf.mxu0 }
 0x178   :  { %1599 = vmatpush.msrb.mxu0 %v80_v14  ;;  %1656 = vmatpush.msrb.mxu3 %v692_v17  ;;  %v656_v8 = vld [vmem:[#allocation5 + $0x12a8] sm:$0xff]  ;;  %v549_v57 = vld [vmem:[#allocation5 + $0xf50] sm:$0xff] }
 0x179   :  { %1619 = vmatpush.msrb.mxu1 %v272_v15  ;;  %1639 = vmatpush.msrb.mxu2 %v464_v16  ;;  %v644_v36 = vld [vmem:[#allocation5 + $0x1248] sm:$0xff]  ;;  %v153_v58 = vld [vmem:[#allocation5 + $0x2f0] sm:$0xff]  ;;  %v2289_v16 = vpop.f32.mrf.mxu3 }
 0x17a   :  { %1600 = vmatpush.msrb.mxu0 %v68_v18  ;;  %1541 = vmatmul.f32.vlgmr.msra.gmra.mxu1 %v2264_v2  ;;  %v2274_v43 = vld.sshfl [vmem:[#allocation1 + $0x18] sm:$0xff pattern:$0x73625140]  ;;  %v777_v60 = vld [vmem:[#allocation5 + $0x1670] sm:$0xff] }
 0x17b   :  { %1620 = vmatpush.msrb.mxu1 %v260_v21  ;;  %1640 = vmatpush.msrb.mxu2 %v452_v22  ;;  %v345_v61 = vld [vmem:[#allocation5 + $0x8f0] sm:$0xff]  ;;  %v2291_v21 = vpop.f32.mrf.mxu1 }
 0x17c   :  { %1521 = vmatmul.f32.vlgmr.msra.gmra.mxu0 %v2261_v0  ;;  %1561 = vmatmul.f32.vlgmr.msra.gmra.mxu2 %v2267_v28  ;;  %v537_v62 = vld [vmem:[#allocation5 + $0xef0] sm:$0xff] }
 0x17d   :  { %1657 = vmatpush.msrb.mxu3 %v680_v24  ;;  %1665 = vmatpush.msra.mxu0 %v249_v25  ;;  %v141_v63 = vld [vmem:[#allocation5 + $0x290] sm:$0xff] }
 0x17e   :  { %1685 = vmatpush.msra.mxu1 %v441_v26  ;;  %1705 = vmatpush.msra.mxu2 %v633_v1  ;;  %v765_v3 = vld [vmem:[#allocation5 + $0x1610] sm:$0xff] }
 0x17f   :  { %1658 = vmatpush.msrb.mxu3 %v668_v29  ;;  %1666 = vmatpush.msra.mxu0 %v237_v30  ;;  %v333_v4 = vld [vmem:[#allocation5 + $0x890] sm:$0xff]  ;;  %v2293_v30 = vpop.f32.mrf.mxu2 }
 0x180   :  { %1686 = vmatpush.msra.mxu1 %v429_v31  ;;  %1706 = vmatpush.msra.mxu2 %v621_v32  ;;  %v525_v6 = vld [vmem:[#allocation5 + $0xe90] sm:$0xff] }
 0x181   :  { %1659 = vmatpush.msrb.mxu3 %v656_v8  ;;  %1667 = vmatpush.msra.mxu0 %v225_v33  ;;  %v129_v7 = vld [vmem:[#allocation5 + $0x230] sm:$0xff] }
 0x182   :  { %1687 = vmatpush.msra.mxu1 %v417_v34  ;;  %1707 = vmatpush.msra.mxu2 %v609_v35  ;;  %v753_v9 = vld [vmem:[#allocation5 + $0x15b0] sm:$0xff]  ;;  %v2295_v34 = vpop.f32.mrf.mxu0 }
 0x183   :  { %1660 = vmatpush.msrb.mxu3 %v644_v36  ;;  %1668 = vmatpush.msra.mxu0 %v213_v37  ;;  %v321_v10 = vld [vmem:[#allocation5 + $0x830] sm:$0xff] }
 0x184   :  { %1688 = vmatpush.msra.mxu1 %v405_v38  ;;  %1708 = vmatpush.msra.mxu2 %v597_v19  ;;  %v513_v12 = vld [vmem:[#allocation5 + $0xe30] sm:$0xff]  ;;  %v2297_v19 = vpop.f32.mrf.mxu3 }
 0x185   :  { %1581 = vmatmul.f32.vlgmr.msra.gmra.mxu3 %v2274_v43  ;;  %1669 = vmatpush.msra.mxu0 %v201_v27  ;;  %v117_v13 = vld [vmem:[#allocation5 + $0x1d0] sm:$0xff] }
 0x186   :  { %1725 = vmatpush.msra.mxu3 %v825_v40  ;;  %1689 = vmatpush.msra.mxu1 %v393_v41  ;;  %v741_v14 = vld [vmem:[#allocation5 + $0x1550] sm:$0xff]  ;;  %v2299_v40 = vpop.f32.mrf.mxu1 }
 0x187   :  { %1709 = vmatpush.msra.mxu2 %v585_v42  ;;  %1670 = vmatpush.msra.mxu0 %v189_v20  ;;  %v309_v15 = vld [vmem:[#allocation5 + $0x7d0] sm:$0xff]  ;;  %v250_v42 = vld [vmem:[#allocation5 + $0x5f8] sm:$0xff] }
 0x188   :  { %1726 = vmatpush.msra.mxu3 %v813_v44  ;;  %1690 = vmatpush.msra.mxu1 %v381_v45  ;;  %v501_v17 = vld [vmem:[#allocation5 + $0xdd0] sm:$0xff]  ;;  %v442_v20 = vld [vmem:[#allocation5 + $0xbf8] sm:$0xff]  ;;  %v2302_v45 = vpop.f32.mrf.mxu2 }
 0x189   :  { %1710 = vmatpush.msra.mxu2 %v573_v47  ;;  %1671 = vmatpush.msra.mxu0 %v177_v48  ;;  %v105_v18 = vld [vmem:[#allocation5 + $0x170] sm:$0xff]  ;;  %v634_v44 = vld [vmem:[#allocation5 + $0x11f8] sm:$0xff] }
 0x18a   :  { %1727 = vmatpush.msra.mxu3 %v801_v49  ;;  %1691 = vmatpush.msra.mxu1 %v369_v50  ;;  %v729_v22 = vld [vmem:[#allocation5 + $0x14f0] sm:$0xff]  ;;  %v238_v48 = vld [vmem:[#allocation5 + $0x598] sm:$0xff] }
 0x18b   :  { %1711 = vmatpush.msra.mxu2 %v561_v52  ;;  %1672 = vmatpush.msra.mxu0 %v165_v53  ;;  %v297_v24 = vld [vmem:[#allocation5 + $0x770] sm:$0xff]  ;;  %v430_v49 = vld [vmem:[#allocation5 + $0xb98] sm:$0xff]  ;;  %v2306_v52 = vpop.f32.mrf.mxu0 }
 0x18c   :  { %1728 = vmatpush.msra.mxu3 %v789_v54  ;;  %1692 = vmatpush.msra.mxu1 %v357_v55  ;;  %v489_v25 = vld [vmem:[#allocation5 + $0xd70] sm:$0xff]  ;;  %v622_v50 = vld [vmem:[#allocation5 + $0x1198] sm:$0xff] }
 0x18d   :  { %1712 = vmatpush.msra.mxu2 %v549_v57  ;;  %1673 = vmatpush.msra.mxu0 %v153_v58  ;;  %v93_v26 = vld [vmem:[#allocation5 + $0x110] sm:$0xff]  ;;  %v226_v54 = vld [vmem:[#allocation5 + $0x538] sm:$0xff]  ;;  %v2308_v58 = vpop.f32.mrf.mxu3 }
 0x18e   :  { %1729 = vmatpush.msra.mxu3 %v777_v60  ;;  %1693 = vmatpush.msra.mxu1 %v345_v61  ;;  %v717_v1 = vld [vmem:[#allocation5 + $0x1490] sm:$0xff]  ;;  %v418_v55 = vld [vmem:[#allocation5 + $0xb38] sm:$0xff] }
 0x18f   :  { %1713 = vmatpush.msra.mxu2 %v537_v62  ;;  %1674 = vmatpush.msra.mxu0 %v141_v63  ;;  %v285_v29 = vld [vmem:[#allocation5 + $0x710] sm:$0xff]  ;;  %v610_v57 = vld [vmem:[#allocation5 + $0x1138] sm:$0xff]  ;;  %v2310_v62 = vpop.f32.mrf.mxu1 }
 0x190   :  { %1730 = vmatpush.msra.mxu3 %v765_v3  ;;  %1694 = vmatpush.msra.mxu1 %v333_v4  ;;  %v477_v31 = vld [vmem:[#allocation5 + $0xd10] sm:$0xff]  ;;  %v214_v61 = vld [vmem:[#allocation5 + $0x4d8] sm:$0xff] }
 0x191   :  { %1714 = vmatpush.msra.mxu2 %v525_v6  ;;  %1675 = vmatpush.msra.mxu0 %v129_v7  ;;  %v81_v32 = vld [vmem:[#allocation5 + $0xb0] sm:$0xff]  ;;  %v406_v63 = vld [vmem:[#allocation5 + $0xad8] sm:$0xff] }
 0x192   :  { %1731 = vmatpush.msra.mxu3 %v753_v9  ;;  %1695 = vmatpush.msra.mxu1 %v321_v10  ;;  %v705_v8 = vld [vmem:[#allocation5 + $0x1430] sm:$0xff]  ;;  %v598_v3 = vld [vmem:[#allocation5 + $0x10d8] sm:$0xff]  ;;  %v2312_v9 = vpop.f32.mrf.mxu2 }
 0x193   :  { %1715 = vmatpush.msra.mxu2 %v513_v12  ;;  %1676 = vmatpush.msra.mxu0 %v117_v13  ;;  %v273_v33 = vld [vmem:[#allocation5 + $0x6b0] sm:$0xff]  ;;  %v202_v4 = vld [vmem:[#allocation5 + $0x478] sm:$0xff] }
 0x194   :  { %1732 = vmatpush.msra.mxu3 %v741_v14  ;;  %1696 = vmatpush.msra.mxu1 %v309_v15  ;;  %v465_v35 = vld [vmem:[#allocation5 + $0xcb0] sm:$0xff]  ;;  %v826_v6 = vld [vmem:[#allocation5 + $0x17f8] sm:$0xff]  ;;  %v2315_v15 = vpop.f32.mrf.mxu0 }
 0x195   :  { %1716 = vmatpush.msra.mxu2 %v501_v17  ;;  %1677 = vmatpush.msra.mxu0 %v105_v18  ;;  %v69_v36 = vld [vmem:[#allocation5 + $0x50] sm:$0xff]  ;;  %v394_v7 = vld [vmem:[#allocation5 + $0xa78] sm:$0xff] }
 0x196   :  { %1733 = vmatpush.msra.mxu3 %v729_v22  ;;  %1697 = vmatpush.msra.mxu1 %v297_v24  ;;  %v693_v37 = vld [vmem:[#allocation5 + $0x13d0] sm:$0xff]  ;;  %v586_v10 = vld [vmem:[#allocation5 + $0x1078] sm:$0xff] }
 0x197   :  { %1717 = vmatpush.msra.mxu2 %v489_v25  ;;  %1678 = vmatpush.msra.mxu0 %v93_v26  ;;  %v261_v38 = vld [vmem:[#allocation5 + $0x650] sm:$0xff]  ;;  %v190_v12 = vld [vmem:[#allocation5 + $0x418] sm:$0xff]  ;;  %v2317_v25 = vpop.f32.mrf.mxu3 }
 0x198   :  { %1734 = vmatpush.msra.mxu3 %v717_v1  ;;  %1698 = vmatpush.msra.mxu1 %v285_v29  ;;  %v453_v27 = vld [vmem:[#allocation5 + $0xc50] sm:$0xff]  ;;  %v814_v13 = vld [vmem:[#allocation5 + $0x1798] sm:$0xff]  ;;  %v2319_v29 = vpop.f32.mrf.mxu1 }
 0x199   :  { %1718 = vmatpush.msra.mxu2 %v477_v31  ;;  %1679 = vmatpush.msra.mxu0 %v81_v32  ;;  %v681_v41 = vld [vmem:[#allocation5 + $0x1370] sm:$0xff]  ;;  %v382_v14 = vld [vmem:[#allocation5 + $0xa18] sm:$0xff] }
 0x19a   :  { %1735 = vmatpush.msra.mxu3 %v705_v8  ;;  %1699 = vmatpush.msra.mxu1 %v273_v33  ;;  %v669_v47 = vld [vmem:[#allocation5 + $0x1310] sm:$0xff]  ;;  %v574_v17 = vld [vmem:[#allocation5 + $0x1018] sm:$0xff] }
 0x19b   :  { %1719 = vmatpush.msra.mxu2 %v465_v35  ;;  %1680 = vmatpush.msra.mxu0 %v69_v36  ;;  %v657_v53 = vld [vmem:[#allocation5 + $0x12b0] sm:$0xff]  ;;  %v178_v18 = vld [vmem:[#allocation5 + $0x3b8] sm:$0xff] }
 0x19c   :  { %1736 = vmatpush.msra.mxu3 %v693_v37  ;;  %1700 = vmatpush.msra.mxu1 %v261_v38  ;;  %v645_v60 = vld [vmem:[#allocation5 + $0x1250] sm:$0xff]  ;;  %v802_v22 = vld [vmem:[#allocation5 + $0x1738] sm:$0xff]  ;;  %v2321_v37 = vpop.f32.mrf.mxu2 }
 0x19d   :  { %1720 = vmatpush.msra.mxu2 %v453_v27  ;;  %1601 = vmatmul.f32.vlgmr.msrb.gmra.mxu0 %v2261_v0  ;;  %v370_v24 = vld [vmem:[#allocation5 + $0x9b8] sm:$0xff] }
 0x19e   :  { %1621 = vmatmul.f32.vlgmr.msrb.gmra.mxu1 %v2264_v2  ;;  %1641 = vmatmul.f32.vlgmr.msrb.gmra.mxu2 %v2267_v28  ;;  %v562_v26 = vld [vmem:[#allocation5 + $0xfb8] sm:$0xff] }
 0x19f   :  { %1737 = vmatpush.msra.mxu3 %v681_v41  ;;  %1745 = vmatpush.msrb.mxu0 %v250_v42  ;;  %v166_v1 = vld [vmem:[#allocation5 + $0x358] sm:$0xff]  ;;  %v2323_v41 = vld [vmem:[#allocation7] sm:$0xff] }
 0x1a0   :  { %1765 = vmatpush.msrb.mxu1 %v442_v20  ;;  %1785 = vmatpush.msrb.mxu2 %v634_v44  ;;  %v790_v31 = vld [vmem:[#allocation5 + $0x16d8] sm:$0xff] }
 0x1a1   :  { %1738 = vmatpush.msra.mxu3 %v669_v47  ;;  %1746 = vmatpush.msrb.mxu0 %v238_v48  ;;  %v358_v32 = vld [vmem:[#allocation5 + $0x958] sm:$0xff]  ;;  %v837_v48 = vperm.slane %v2323_v41, 6 }
 0x1a2   :  { %1766 = vmatpush.msrb.mxu1 %v430_v49  ;;  %1786 = vmatpush.msrb.mxu2 %v622_v50  ;;  %v550_v8 = vld [vmem:[#allocation5 + $0xf58] sm:$0xff]  ;;  %v835_v50 = vperm.slane %v2323_v41, 4 }
 0x1a3   :  { %1739 = vmatpush.msra.mxu3 %v657_v53  ;;  %1747 = vmatpush.msrb.mxu0 %v226_v54  ;;  %v154_v33 = vld [vmem:[#allocation5 + $0x2f8] sm:$0xff] }
 0x1a4   :  { %1767 = vmatpush.msrb.mxu1 %v418_v55  ;;  %1787 = vmatpush.msrb.mxu2 %v610_v57  ;;  %v778_v35 = vld [vmem:[#allocation5 + $0x1678] sm:$0xff]  ;;  %v836_v55 = vperm.slane %v2323_v41, 5  ;;  %v2328_v57 = vpop.f32.mrf.mxu3 }
 0x1a5   :  { %1740 = vmatpush.msra.mxu3 %v645_v60  ;;  %1748 = vmatpush.msrb.mxu0 %v214_v61  ;;  %v346_v36 = vld [vmem:[#allocation5 + $0x8f8] sm:$0xff] }
 0x1a6   :  { %1768 = vmatpush.msrb.mxu1 %v406_v63  ;;  %1788 = vmatpush.msrb.mxu2 %v598_v3  ;;  %v538_v38 = vld [vmem:[#allocation5 + $0xef8] sm:$0xff]  ;;  %v831_v63 = vperm.slane %v2323_v41, 0 }
 0x1a7   :  { %1661 = vmatmul.f32.vlgmr.msrb.gmra.mxu3 %v2274_v43  ;;  %1749 = vmatpush.msrb.mxu0 %v202_v4  ;;  %v142_v27 = vld [vmem:[#allocation5 + $0x298] sm:$0xff] }
 0x1a8   :  { %1805 = vmatpush.msrb.mxu3 %v826_v6  ;;  %1769 = vmatpush.msrb.mxu1 %v394_v7  ;;  %v766_v42 = vld [vmem:[#allocation5 + $0x1618] sm:$0xff]  ;;  %v832_v7 = vperm.slane %v2323_v41, 1 }
 0x1a9   :  { %1789 = vmatpush.msrb.mxu2 %v586_v10  ;;  %1750 = vmatpush.msrb.mxu0 %v190_v12  ;;  %v334_v20 = vld [vmem:[#allocation5 + $0x898] sm:$0xff] }
 0x1aa   :  { %1806 = vmatpush.msrb.mxu3 %v814_v13  ;;  %1770 = vmatpush.msrb.mxu1 %v382_v14  ;;  %v526_v44 = vld [vmem:[#allocation5 + $0xe98] sm:$0xff]  ;;  %v833_v13 = vperm.slane %v2323_v41, 2  ;;  %v1203_v14 = vadd.f32 %v2306_v52, %v835_v50  ;;  %v963_v52 = vadd.f32 %v2279_v51, %v832_v7  ;;  %v834_v50 = vperm.slane %v2323_v41, 3 }
 0x1ab   :  { %1790 = vmatpush.msrb.mxu2 %v574_v17  ;;  %1751 = vmatpush.msrb.mxu0 %v178_v18  ;;  %v130_v47 = vld [vmem:[#allocation5 + $0x238] sm:$0xff]  ;;  %v1283_v17 = vadd.f32 %v2315_v15, %v836_v55 }
 0x1ac   :  { %1807 = vmatpush.msrb.mxu3 %v802_v22  ;;  %1771 = vmatpush.msrb.mxu1 %v370_v24  ;;  %v754_v53 = vld [vmem:[#allocation5 + $0x15b8] sm:$0xff] }
 0x1ad   :  { %1791 = vmatpush.msrb.mxu2 %v562_v26  ;;  %1752 = vmatpush.msrb.mxu0 %v166_v1  ;;  %v322_v54 = vld [vmem:[#allocation5 + $0x838] sm:$0xff]  ;;  %v883_v26 = vadd.f32 %v2270_v23, %v831_v63  ;;  %v1223_v23 = vadd.f32 %v2310_v62, %v1203_v14  ;;  %v983_v62 = vadd.f32 %v2283_v59, %v963_v52 }
 0x1ae   :  { %1808 = vmatpush.msrb.mxu3 %v790_v31  ;;  %1772 = vmatpush.msrb.mxu1 %v358_v32  ;;  %v514_v60 = vld [vmem:[#allocation5 + $0xe38] sm:$0xff]  ;;  %v838_v32 = vperm.slane %v2323_v41, 7 }
 0x1af   :  { %1792 = vmatpush.msrb.mxu2 %v550_v8  ;;  %1753 = vmatpush.msrb.mxu0 %v154_v33  ;;  %v118_v61 = vld [vmem:[#allocation5 + $0x1d8] sm:$0xff] }
 0x1b0   :  { %1809 = vmatpush.msrb.mxu3 %v778_v35  ;;  %1773 = vmatpush.msrb.mxu1 %v346_v36  ;;  %v1362_v49 = vpop.f32.mrf.mxu0  ;;  %v742_v3 = vld [vmem:[#allocation5 + $0x1558] sm:$0xff]  ;;  %v1043_v35 = vadd.f32 %v2287_v11, %v833_v13 }
 0x1b1   :  { %1793 = vmatpush.msrb.mxu2 %v538_v38  ;;  %1754 = vmatpush.msrb.mxu0 %v142_v27  ;;  %v310_v4 = vld [vmem:[#allocation5 + $0x7d8] sm:$0xff]  ;;  %v1363_v12 = vadd.f32 %v1362_v49, %v837_v48  ;;  %v1303_v27 = vadd.f32 %v2319_v29, %v1283_v17 }
 0x1b2   :  { %1810 = vmatpush.msrb.mxu3 %v766_v42  ;;  %1774 = vmatpush.msrb.mxu1 %v334_v20  ;;  %v502_v10 = vld [vmem:[#allocation5 + $0xdd8] sm:$0xff]  ;;  %v1063_v55 = vadd.f32 %v2291_v21, %v1043_v35  ;;  %v1123_v21 = vadd.f32 %v2295_v34, %v834_v50 }
 0x1b3   :  { %1794 = vmatpush.msrb.mxu2 %v526_v44  ;;  %1755 = vmatpush.msrb.mxu0 %v130_v47  ;;  %v1382_v6 = vpop.f32.mrf.mxu1  ;;  %v730_v18 = vld [vmem:[#allocation5 + $0x14f8] sm:$0xff]  ;;  %v903_v47 = vadd.f32 %v2272_v39, %v883_v26  ;;  %v1323_v63 = vadd.f32 %v2321_v37, %v1303_v27 }
 0x1b4   :  { %1811 = vmatpush.msrb.mxu3 %v754_v53  ;;  %1775 = vmatpush.msrb.mxu1 %v322_v54  ;;  %v106_v22 = vld [vmem:[#allocation5 + $0x178] sm:$0xff]  ;;  %v1402_v24 = vpop.f32.mrf.mxu2  ;;  %v1383_v33 = vadd.f32 %v1382_v6, %v1363_v12  ;;  %v1083_v37 = vadd.f32 %v2293_v30, %v1063_v55  ;;  %v1143_v30 = vadd.f32 %v2299_v40, %v1123_v21 }
 0x1b5   :  { %1795 = vmatpush.msrb.mxu2 %v514_v60  ;;  %1756 = vmatpush.msrb.mxu0 %v118_v61  ;;  %v298_v1 = vld [vmem:[#allocation5 + $0x778] sm:$0xff]  ;;  %v1243_v60 = vadd.f32 %v2312_v9, %v1223_v23  ;;  %v923_v41 = vadd.f32 %v2277_v46, %v903_v47  ;;  %v1343_v46 = vadd.f32 %v2328_v57, %v1323_v63 }
 0x1b6   :  { %1812 = vmatpush.msrb.mxu3 %v742_v3  ;;  %1776 = vmatpush.msrb.mxu1 %v310_v4  ;;  %v490_v31 = vld [vmem:[#allocation5 + $0xd78] sm:$0xff]  ;;  %v1403_v53 = vadd.f32 %v1402_v24, %v1383_v33  ;;  %v1003_v4 = vadd.f32 %v2285_v5, %v983_v62  ;;  %v1103_v57 = vadd.f32 %v2297_v19, %v1083_v37  ;;  %v828_v19 = vld [vmem:[#allocation7 + $0x8] sm:$0xf] }
 0x1b7   :  { %1796 = vmatpush.msrb.mxu2 %v502_v10  ;;  %1681 = vmatmul.f32.vlgmr.msra.gmra.mxu0 %v2261_v0  ;;  %v718_v15 = vld [vmem:[#allocation5 + $0x1498] sm:$0xff]  ;;  %v1422_v20 = vpop.f32.mrf.mxu3  ;;  %v1263_v10 = vadd.f32 %v2317_v25, %v1243_v60  ;;  %v943_v34 = vadd.f32 %v2281_v56, %v923_v41  ;;  %v1163_v56 = vadd.f32 %v2302_v45, %v1143_v30 }
 0x1b8   :  { %1701 = vmatmul.f32.vlgmr.msra.gmra.mxu1 %v2264_v2  ;;  %1721 = vmatmul.f32.vlgmr.msra.gmra.mxu2 %v2267_v28  ;;  %v94_v8 = vld [vmem:[#allocation5 + $0x118] sm:$0xff]  ;;  %v1423_v6 = vadd.f32 %v1422_v20, %v1403_v53  ;;  %v1023_v13 = vadd.f32 %v2289_v16, %v1003_v4 }
 0x1b9   :  { %1813 = vmatpush.msrb.mxu3 %v730_v18  ;;  %1757 = vmatpush.msrb.mxu0 %v106_v22  ;;  %v286_v36 = vld [vmem:[#allocation5 + $0x718] sm:$0xff]  ;;  %v1825_v14 = vmul.f32 0.044194173, %v943_v34  ;;  %v1827_v18 = vmul.f32 0.044194173, %v1103_v57  ;;  %v1183_v16 = vadd.f32 %v2308_v58, %v1163_v56  ;;  %v839_v22 = vperm.slane %v828_v19, 0 }
 0x1ba   :  { %v478_v38 = vld [vmem:[#allocation5 + $0xd18] sm:$0xff]  ;;  %1777 = vmatpush.msrb.mxu1 %v298_v1  ;;  %1797 = vmatpush.msrb.mxu2 %v490_v31  ;;  %v1442_v44 = vpop.f32.mrf.mxu0  ;;  %v1826_v17 = vmul.f32 0.044194173, %v1023_v13 }
 0x1bb   :  { %v706_v51 = vld [vmem:[#allocation5 + $0x1438] sm:$0xff]  ;;  %1814 = vmatpush.msrb.mxu3 %v718_v15  ;;  %1758 = vmatpush.msrb.mxu0 %v94_v8  ;;  %v1443_v49 = vadd.f32 %v1442_v44, %v838_v32  ;;  %v1828_v40 = vmul.f32 0.044194173, %v1183_v16 }
 0x1bc   :  { %v82_v42 = vld [vmem:[#allocation5 + $0xb8] sm:$0xff]  ;;  %1778 = vmatpush.msrb.mxu1 %v286_v36  ;;  %1798 = vmatpush.msrb.mxu2 %v478_v38 }
 0x1bd   :  { %v274_v48 = vld [vmem:[#allocation5 + $0x6b8] sm:$0xff]  ;;  %1815 = vmatpush.msrb.mxu3 %v706_v51  ;;  %1759 = vmatpush.msrb.mxu0 %v82_v42  ;;  %v1462_v61 = vpop.f32.mrf.mxu1  ;;  %v841_v51 = vperm.slane %v828_v19, 2 }
 0x1be   :  { %v466_v11 = vld [vmem:[#allocation5 + $0xcb8] sm:$0xff]  ;;  %1779 = vmatpush.msrb.mxu1 %v274_v48  ;;  %v1463_v3 = vadd.f32 %v1462_v61, %v1443_v49  ;;  %1741 = vmatmul.f32.vlgmr.msra.gmra.mxu3 %v2274_v43  ;;  %v1482_v7 = vpop.f32.mrf.mxu2 }
 0x1bf   :  { %v694_v29 = vld [vmem:[#allocation5 + $0x13d8] sm:$0xff]  ;;  %1799 = vmatpush.msrb.mxu2 %v466_v11  ;;  %v842_v11 = vperm.slane %v828_v19, 3 }
 0x1c0   :  { %v70_v54 = vld [vmem:[#allocation5 + $0x58] sm:$0xff]  ;;  %1816 = vmatpush.msrb.mxu3 %v694_v29  ;;  %v1483_v12 = vadd.f32 %v1482_v7, %v1463_v3 }
 0x1c1   :  { %v262_v39 = vld [vmem:[#allocation5 + $0x658] sm:$0xff]  ;;  %1760 = vmatpush.msrb.mxu0 %v70_v54 }
 0x1c2   :  { %v454_v59 = vld [vmem:[#allocation5 + $0xc58] sm:$0xff]  ;;  %1780 = vmatpush.msrb.mxu1 %v262_v39  ;;  %1761 = vmatmul.f32.vlgmr.msrb.gmra.mxu0 %v2261_v0  ;;  %v1502_v0 = vpop.f32.mrf.mxu3 }
 0x1c3   :  { %v682_v9 = vld [vmem:[#allocation5 + $0x1378] sm:$0xff]  ;;  %1800 = vmatpush.msrb.mxu2 %v454_v59  ;;  %1781 = vmatmul.f32.vlgmr.msrb.gmra.mxu1 %v2264_v2 }
 0x1c4   :  { %1801 = vmatmul.f32.vlgmr.msrb.gmra.mxu2 %v2267_v28  ;;  %v670_v5 = vld [vmem:[#allocation5 + $0x1318] sm:$0xff]  ;;  %1817 = vmatpush.msrb.mxu3 %v682_v9  ;;  %v1503_v28 = vadd.f32 %v1502_v0, %v1483_v12 }
 0x1c5   :  { %1844 = vmatpush.xpose.msra.mxu0 %v1263_v10  ;;  %1864 = vmatpush.xpose.msra.mxu1 %v1343_v46  ;;  %v658_v25 = vld [vmem:[#allocation5 + $0x12b8] sm:$0xff] }
 0x1c6   :  { %1884 = vmatpush.xpose.msra.mxu2 %v1423_v6  ;;  %1818 = vmatpush.msrb.mxu3 %v670_v5  ;;  %v646_v2 = vld [vmem:[#allocation5 + $0x1258] sm:$0xff] }
 0x1c8   :  { %1819 = vmatpush.msrb.mxu3 %v658_v25 }
 0x1ca   :  { %1820 = vmatpush.msrb.mxu3 %v646_v2  ;;  %1845 = vmatmul.f32.vlgmr.msra.gmra.mxu0 %v1825_v14 }
 0x1cb   :  { %1821 = vmatmul.f32.vlgmr.msrb.gmra.mxu3 %v2274_v43  ;;  %1865 = vmatmul.f32.vlgmr.msra.gmra.mxu1 %v1826_v17  ;;  %v840_v43 = vperm.slane %v828_v19, 1 }
 0x1cc   :  { %1885 = vmatmul.f32.vlgmr.msra.gmra.mxu2 %v1827_v18  ;;  %1904 = vmatpush.xpose.msra.mxu3 %v1503_v28 }
 0x1d3   :  { %1905 = vmatmul.f32.vlgmr.msra.gmra.mxu3 %v1828_v40 }
 0x1f7   :  { %v1542_v1 = vpop.f32.mrf.mxu1 }
 0x1f9   :  { %v1522_v24 = vpop.f32.mrf.mxu0 }
 0x1fa   :  { %v1523_v26 = vadd.f32 %v1522_v24, %v839_v22 }
 0x1fc   :  { %v1543_v31 = vadd.f32 %v1542_v1, %v1523_v26 }
 0x1ff   :  { %v1562_v32 = vpop.f32.mrf.mxu2 }
 0x200   :  { %v1563_v45 = vadd.f32 %v1562_v32, %v1543_v31 }
 0x208   :  { %v1582_v52 = vpop.f32.mrf.mxu3 }
 0x209   :  { %v1583_v15 = vadd.f32 %v1582_v52, %v1563_v45 }
 0x20b   :  { %2050 = vmatpush.msk.msrb.mxu0 %vm1925_vm0, %v1583_v15 }
 0x21a   :  { %v1602_v8 = vpop.f32.mrf.mxu0 }
 0x21b   :  { %v1603_v33 = vadd.f32 %v1602_v8, %v840_v43  ;;  %v1622_v35 = vpop.f32.mrf.mxu1 }
 0x21d   :  { %v1623_v58 = vadd.f32 %v1622_v35, %v1603_v33 }
 0x221   :  { %v1642_v23 = vpop.f32.mrf.mxu2 }
 0x222   :  { %v1643_v36 = vadd.f32 %v1642_v23, %v1623_v58 }
 0x22a   :  { %v1662_v38 = vpop.f32.mrf.mxu3 }
 0x22b   :  { %v1663_v27 = vadd.f32 %v1662_v38, %v1643_v36 }
 0x22d   :  { %2052 = vmatpush.msk.msrb.mxu1 %vm1925_vm0, %v1663_v27 }
 0x234   :  { %v1682_v42 = vpop.f32.mrf.mxu0 }
 0x235   :  { %v1683_v20 = vadd.f32 %v1682_v42, %v841_v51  ;;  %v1702_v44 = vpop.f32.mrf.mxu1 }
 0x237   :  { %v1703_v47 = vadd.f32 %v1702_v44, %v1683_v20 }
 0x23b   :  { %v1722_v48 = vpop.f32.mrf.mxu2 }
 0x23c   :  { %v1723_v49 = vadd.f32 %v1722_v48, %v1703_v47 }
 0x23f   :  { %v1762_v62 = vpop.f32.mrf.mxu0 }
 0x240   :  { %v1763_v50 = vadd.f32 %v1762_v62, %v842_v11  ;;  %v1782_v54 = vpop.f32.mrf.mxu1 }
 0x241   :  { %v1742_v29 = vpop.f32.mrf.mxu3 }
 0x242   :  { %v1743_v53 = vadd.f32 %v1742_v29, %v1723_v49  ;;  %v1783_v55 = vadd.f32 %v1782_v54, %v1763_v50 }
 0x244   :  { %2054 = vmatpush.msk.msrb.mxu2 %vm1925_vm0, %v1743_v53 }
 0x247   :  { %v1802_v60 = vpop.f32.mrf.mxu2  ;;  %v1846_v59 = vpop.f32.mrf.mxu0 }
 0x248   :  { %v1803_v39 = vadd.f32 %v1802_v60, %v1783_v55  ;;  %v1866_v41 = vpop.f32.mrf.mxu1 }
 0x249   :  { %v1867_v4 = vadd.f32 %v1866_v41, %v1846_v59 }
 0x24e   :  { %v1822_v61 = vpop.f32.mrf.mxu3 }
 0x24f   :  { %v1823_v63 = vadd.f32 %v1822_v61, %v1803_v39  ;;  %v1886_v3 = vpop.f32.mrf.mxu2 }
 0x250   :  { %v1887_v21 = vadd.f32 %v1886_v3, %v1867_v4 }
 0x251   :  { %2056 = vmatpush.msk.msrb.mxu3 %vm1925_vm0, %v1823_v63 }
 0x256   :  { %v1906_v9 = vpop.f32.mrf.mxu3 }
 0x257   :  { %v1907_v6 = vadd.f32 %v1906_v9, %v1887_v21 }
 0x259   :  { %v1910_v7 = vsel %vm1909_vm1, %v1907_v6, -inf }
 0x25a   :  { %1911 = vmax.xlane.f32.xlu0 %v1910_v7 }
 0x2cd   :  { %v1912_v37 = vpop.xlane.xlu0 %1911 }
 0x2ce   :  { %v1913_v10 = vsub.f32 %v1907_v6, %v1912_v37 }
 0x2d0   :  { %v1914_v46 = vmul.f32 1.442695, %v1913_v10 }
 0x2d2   :  { %2064 = vpow2.f32 %v1914_v46 }
 0x2d8   :  { %v2065_v5 = vpop.eup %2064 }
 0x2d9   :  { %v1916_v34 = vsel %vm1909_vm1, %v2065_v5, 0.0 }
 0x2da   :  { %1917 = vadd.xlane.f32.xlu0 %v1916_v34 }
 0x34d   :  { %v1918_v12 = vpop.xlane.xlu0 %1917 }
 0x34e   :  { %2066 = vrcp.f32 %v1918_v12 }
 0x354   :  { %v2067_v13 = vpop.eup %2066 }
 0x355   :  { %v1920_v30 = vmul.f32 %v2067_v13, %v2065_v5 }
 0x357   :  { %2051 = vmatmul.msk.f32.vlgmr.msrb.gmra.mxu0 %vm1921_vm2, %v1920_v30  ;;  %2053 = vmatmul.msk.f32.vlgmr.msrb.gmra.mxu1 %vm1921_vm2, %v1920_v30 }
 0x358   :  { %2055 = vmatmul.msk.f32.vlgmr.msrb.gmra.mxu2 %vm1921_vm2, %v1920_v30  ;;  %2057 = vmatmul.msk.f32.vlgmr.msrb.gmra.mxu3 %vm1921_vm2, %v1920_v30 }
 0x3d4   :  { %v1975_v25 = vpop.f32.mrf.mxu1  ;;  %v1955_v17 = vpop.f32.mrf.mxu0 }
 0x3d5   :  { %v2022_v0 = vrot.slane %v1975_v25, 6 }
 0x3d7   :  { %v2025_v56 = vsel %vm1925_vm0, %v1955_v17, %v2022_v0 }
 0x3db   :  { %v1995_v57 = vpop.f32.mrf.mxu2  ;;  %v2015_v2 = vpop.f32.mrf.mxu3 }
 0x3dc   :  { %v2023_v14 = vrot.slane %v1995_v57, 4  ;;  %v2024_v28 = vrot.slane %v2015_v2, 2 }
 0x3de   :  { %v2027_v18 = vsel %vm2026_vm3, %v2023_v14, %v2024_v28 }
 0x3df   :  { %v2029_v16 = vsel %vm2028_vm4, %v2025_v56, %v2027_v18 }
 0x3e0   :  { %2031 = vst [vmem:[#allocation8] sm:$0xff] %v2029_v16 }
 0x3e1   :  { %2042 = dma.vmem_to_hbm [thread:$0]  %s2038_s2, 128, %s2040_s30, [#allocation4]  }
 0x3e2   :  { %2176 = dma.done.wait [#allocation4], 128  }
 0x3e3   :  { %2177 = vsyncadd [#allocation4], 4294967168 }
 0x3e4   :  { %2047 = vsyncpa [#allocation3], 1 }
 0x3e5   :  { %2048 = vsyncpa [#allocation6], 1 }
 0x3e6   :  { %2049 = vsyncpa [#allocation4], 1 }

</bundles_post_ra>
